<compile_context>
chip_gen: v7x
topology: tpu7x:2x2x1
jax: 0.10.0
libtpu: 0.0.40
codegen_flags: <defaults>
</compile_context>

<pallas_src>
import functools

import jax
import jax.numpy as jnp
from jax.experimental import pallas as pl
from jax.experimental.pallas import tpu as pltpu

_MiB = 1024 * 1024


def _cdiv(a, b):
    return -(-a // b)


def _round_up(x, m):
    return _cdiv(x, m) * m


# ----------------------------------------------------------------------------
# Kernel
# ----------------------------------------------------------------------------
def _dsc_kernel(x_ref, wdw_ref, wpw_ref, bpw_ref, o_ref, *, ch_rows):
    """One (batch, row-tile) grid step.

    x_ref:   (1, TH+KH-1, Wp, C)  input row window with KH-1 halo rows
    wdw_ref: (KH, KW, C)          depthwise filter (f32; bf16 on chips with a
                                  bf16 VALU)
    wpw_ref: (C, O)               pointwise filter in the MXU operand dtype
    bpw_ref: (1, O)               fused bias (f32): b_pw + b_dw @ w_pw
    o_ref:   (1, TH, Wo, O)       output row tile

    The tile is processed in `ch_rows`-row chunks: the KxK tap sum only ever
    lives in a (ch_rows, Wo, C) f32 accumulator (written once per chunk, not
    KH*KW read-modify-write passes over a full-tile VMEM value), and the MXU
    matmul of chunk i overlaps with the VPU depthwise sum of chunk i+1 in the
    statically unrolled loop (different VLIW slots).
    """
    KH, KW, _C = wdw_ref.shape
    _, TH, Wo, O = o_ref.shape
    dw_dtype = wdw_ref.dtype

    n_chunks = TH // ch_rows
    for c in range(n_chunks):
        h0 = c * ch_rows
        # ---- depthwise KxK conv for this chunk (VPU, f32 accumulation) ----
        acc = jnp.zeros((ch_rows, Wo, _C), jnp.float32)
        for kw in range(KW):
            # One shifted load (and at most one dtype convert) per kw; the KH
            # row shifts below are free leading-dim slices of the window.
            xw = x_ref[0, h0:h0 + ch_rows + KH - 1, kw:kw + Wo, :]
            xw = xw.astype(dw_dtype)
            for kh in range(KH):
                acc = acc + xw[kh:kh + ch_rows, :, :] * wdw_ref[kh, kw, :]
        # ---- pointwise 1x1 conv: (ch_rows*Wo, C) @ (C, O) on the MXU ----
        lhs = acc.reshape(ch_rows * Wo, _C).astype(wpw_ref.dtype)
        out = jnp.dot(lhs, wpw_ref[...], preferred_element_type=jnp.float32)
        out = out + bpw_ref[0, :]
        o_ref[0, h0:h0 + ch_rows, :, :] = (
            out.reshape(ch_rows, Wo, O).astype(o_ref.dtype))


# ----------------------------------------------------------------------------
# Sizing helpers
# ----------------------------------------------------------------------------
def _vmem_capacity_bytes():
    try:
        cap = int(getattr(pltpu.get_tpu_info(), "vmem_capacity_bytes", 0) or 0)
        if cap > 0:
            return cap
    except Exception:
        pass
    return 64 * _MiB  # conservative fallback (v7x-sized per TensorCore)


def _is_v5e():
    try:
        kind = jax.devices()[0].device_kind.lower()
        return ("v5 lite" in kind) or ("v5e" in kind)
    except Exception:
        return False


def _pick_chunk_rows(w_out_p, c_p, o_p, h_out):
    """Rows per in-kernel chunk: matmul M = ch*Wo targets ~256 while keeping
    the f32 (ch, Wo, C) accumulator near the 64-vreg (256 KiB) register file."""
    ch = max(1, _cdiv(256, w_out_p))
    ch = min(ch, _round_up(max(h_out, 1), 8))
    while ch > 1 and ch * w_out_p * max(c_p, o_p) * 4 > 256 * 1024:
        ch = _cdiv(ch, 2)
    return max(1, ch)


def _pick_row_tile(h_out, *, ch_rows, kh, kw, wp, wop, cp, op,
                   xbytes, dwbytes, cbytes, obytes, budget):
    """Largest row tile (multiple of ch_rows) whose estimated VMEM fits."""
    def est(th):
        thp = th + kh - 1
        chp = ch_rows + kh - 1
        chunk_tmp = (kw * chp * wop * cp * dwbytes       # hoisted W-shift windows
                     + ch_rows * wop * cp * 4            # f32 depthwise accumulator
                     + ch_rows * wop * cp * cbytes       # matmul lhs copy
                     + ch_rows * wop * op * (4 + obytes))  # matmul result + store cast
        weights = 2 * (kh * kw * cp * dwbytes + cp * op * cbytes + op * 4)
        return (2 * thp * wp * cp * xbytes               # input block (double-buffered)
                + 2 * th * wop * op * obytes             # output block (double-buffered)
                + 2 * chunk_tmp                          # overlapping chunk live ranges
                + weights)

    th = _round_up(max(h_out, 1), ch_rows)
    while th > ch_rows and est(th) > budget:
        th = max(ch_rows, min(_round_up(th // 2, ch_rows), th - ch_rows))
    return th


# ----------------------------------------------------------------------------
# Public wrapper
# ----------------------------------------------------------------------------
def dsc_forward(x_nchw, w_dw, b_dw, w_pw, b_pw, *, padding=1, stride=1,
                row_tile=None, vmem_budget_bytes=None, vmem_limit_bytes=None,
                matmul_dtype=None):
    """Depthwise-separable conv with PyTorch semantics.

    x_nchw: (B, C, H, W)
    w_dw:   (C, 1, KH, KW)   depthwise weight (groups=C, channel mult 1)
    b_dw:   (C,)
    w_pw:   (O, C, 1, 1)
    b_pw:   (O,)
    returns (B, O, H_out, W_out)
    """
    assert stride == 1, "only stride=1 implemented"
    B, C, H, W = (int(d) for d in x_nchw.shape)
    KH, KW = int(w_dw.shape[2]), int(w_dw.shape[3])
    O = int(w_pw.shape[0])
    assert int(w_dw.shape[0]) == C and int(w_dw.shape[1]) == 1

    x_dtype = x_nchw.dtype
    is_bf16 = x_dtype == jnp.bfloat16
    # MXU operand dtype (accumulation is always f32).  For f32 inputs, an
    # opt-in bf16 matmul can be requested via matmul_dtype (v6e/v7x speedup).
    compute_dtype = matmul_dtype if matmul_dtype is not None else (
        jnp.bfloat16 if is_bf16 else jnp.float32)
    # Depthwise product dtype: bf16 only on chips with a bf16 VALU (v6e/v7x);
    # on v5e cast the window to f32 once per kw instead of per-use unpacks.
    dw_dtype = jnp.bfloat16 if (is_bf16 and not _is_v5e()) else jnp.float32

    xbytes = jnp.dtype(x_dtype).itemsize
    obytes = xbytes
    cbytes = jnp.dtype(compute_dtype).itemsize
    dwbytes = jnp.dtype(dw_dtype).itemsize

    H_out = H + 2 * padding - KH + 1
    W_out = W + 2 * padding - KW + 1
    assert H_out > 0 and W_out > 0

    # Lane-dense channels (unconditional multiples of 128: unmasked stores,
    # full MXU tiles) and sublane-aligned output width (8 f32 / 16 bf16) so
    # the pre-matmul reshape is layout-free.
    C_p = _round_up(C, 128)
    O_p = _round_up(O, 128)
    W_out_p = _round_up(W_out, 16 if is_bf16 else 8)
    Wp_arr = W_out_p + KW - 1

    # Per-generation VMEM sizing (v7x: 64 MiB/TC, v5e/v6e: 128 MiB).
    vmem_cap = _vmem_capacity_bytes()
    if vmem_limit_bytes is None:
        vmem_limit_bytes = max(32 * _MiB, min(vmem_cap - 16 * _MiB, 112 * _MiB))
    if vmem_budget_bytes is None:
        vmem_budget_bytes = max(12 * _MiB, min(vmem_limit_bytes // 2, 56 * _MiB))

    # In-kernel chunk rows and VMEM-bounded row tiling.
    CH = _pick_chunk_rows(W_out_p, C_p, O_p, H_out)
    if row_tile is not None:
        TH = min(_round_up(max(int(row_tile), 1), CH), _round_up(H_out, CH))
    else:
        TH = _pick_row_tile(H_out, ch_rows=CH, kh=KH, kw=KW, wp=Wp_arr,
                            wop=W_out_p, cp=C_p, op=O_p, xbytes=xbytes,
                            dwbytes=dwbytes, cbytes=cbytes, obytes=obytes,
                            budget=vmem_budget_bytes)
    TH = max(CH, TH)
    R = _cdiv(H_out, TH)
    # >= 2 grid steps when B == 1 so megacore 'parallel' sharding can feed
    # both v7x TensorCores.
    if B * R < 2 and H_out > CH:
        TH = max(CH, _round_up(_cdiv(H_out, 2), CH))
        R = _cdiv(H_out, TH)
    assert TH % CH == 0
    H_out_p = R * TH
    THp = TH + KH - 1
    Hp_arr = H_out_p + KH - 1

    # ---- glue (outside the kernel): layout, zero padding, weight repack ----
    # XLA fuses the transpose with the pad into one HBM copy; callers holding
    # NHWC activations can skip both transposes entirely.
    x_nhwc = jnp.transpose(x_nchw, (0, 2, 3, 1))
    x_pad = jnp.pad(
        x_nhwc,
        ((0, 0),
         (padding, Hp_arr - (H + padding)),
         (padding, Wp_arr - (W + padding)),
         (0, C_p - C)))

    wdw = jnp.transpose(w_dw[:, 0, :, :], (1, 2, 0))                   # (KH,KW,C)
    wdw = jnp.pad(wdw, ((0, 0), (0, 0), (0, C_p - C))).astype(dw_dtype)

    wpw = jnp.transpose(w_pw[:, :, 0, 0], (1, 0)).astype(jnp.float32)  # (C, O)
    # Fold the depthwise bias into the pointwise bias (exact: the module has
    # no nonlinearity / norm between the two convs).
    b_eff = b_pw.astype(jnp.float32) + b_dw.astype(jnp.float32) @ wpw  # (O,)
    wpw_k = jnp.pad(wpw, ((0, C_p - C), (0, O_p - O))).astype(compute_dtype)
    bpw_k = jnp.pad(b_eff, (0, O_p - O)).reshape(1, O_p)               # f32

    # Input block: element-indexed on the (untiled) H dim so consecutive row
    # tiles overlap by the KH-1 halo rows; single-tile case stays Blocked.
    if R > 1:
        x_h_dim = pl.Element(THp)
        x_map = lambda b, r: (b, r * TH, 0, 0)
    else:
        x_h_dim = THp
        x_map = lambda b, r: (b, 0, 0, 0)

    kernel = functools.partial(_dsc_kernel, ch_rows=CH)

    out_nhwc = pl.pallas_call(
        kernel,
        out_shape=jax.ShapeDtypeStruct((B, H_out_p, W_out_p, O_p), x_dtype),
        grid_spec=pltpu.PrefetchScalarGridSpec(
            num_scalar_prefetch=0,
            grid=(B, R),
            in_specs=[
                pl.BlockSpec((1, x_h_dim, Wp_arr, C_p), x_map),
                pl.BlockSpec((KH, KW, C_p), lambda b, r: (0, 0, 0)),
                pl.BlockSpec((C_p, O_p), lambda b, r: (0, 0)),
                pl.BlockSpec((1, O_p), lambda b, r: (0, 0)),
            ],
            out_specs=pl.BlockSpec((1, TH, W_out_p, O_p),
                                   lambda b, r: (b, r, 0, 0)),
        ),
        compiler_params=pltpu.CompilerParams(
            dimension_semantics=("parallel", "parallel"),
            vmem_limit_bytes=int(vmem_limit_bytes)),
    )(x_pad, wdw, wpw_k, bpw_k)

    # Crop the H / W / channel padding, NHWC -> NCHW.
    out_nhwc = out_nhwc[:, :H_out, :W_out, :O]
    return jnp.transpose(out_nhwc, (0, 3, 1, 2))


# ----------------------------------------------------------------------------
# Reference + tests
# ----------------------------------------------------------------------------
def _reference(x_nchw, w_dw, b_dw, w_pw, b_pw, padding=1):
    """Pure-JAX reference using lax conv (NCHW, PyTorch semantics)."""
    C = x_nchw.shape[1]
    dw = jax.lax.conv_general_dilated(
        x_nchw, w_dw, window_strides=(1, 1),
        padding=((padding, padding), (padding, padding)),
        feature_group_count=C,
        dimension_numbers=("NCHW", "OIHW", "NCHW"))
    dw = dw + b_dw.reshape(1, -1, 1, 1)
    pw = jax.lax.conv_general_dilated(
        dw, w_pw, window_strides=(1, 1), padding=((0, 0), (0, 0)),
        dimension_numbers=("NCHW", "OIHW", "NCHW"))
    return pw + b_pw.reshape(1, -1, 1, 1)


if __name__ == "__main__":
    key = jax.random.PRNGKey(0)
    KH = KW = 3

    # --- Test 1: required small config (f32, single row tile) -----------------
    B, C_in, C_out, H, W = 2, 4, 8, 16, 16
    k1, k2, k3, k4, k5 = jax.random.split(key, 5)
    x = jax.random.normal(k1, (B, C_in, H, W), jnp.float32)
    w_dw = jax.random.normal(k2, (C_in, 1, KH, KW), jnp.float32) * 0.1
    b_dw = jax.random.normal(k3, (C_in,), jnp.float32) * 0.1
    w_pw = jax.random.normal(k4, (C_out, C_in, 1, 1), jnp.float32) * 0.1
    b_pw = jax.random.normal(k5, (C_out,), jnp.float32) * 0.1

    out = jax.block_until_ready(dsc_forward(x, w_dw, b_dw, w_pw, b_pw))
    ref = jax.block_until_ready(_reference(x, w_dw, b_dw, w_pw, b_pw))
    assert out.shape == (B, C_out, H, W), out.shape
    assert jnp.allclose(out, ref, atol=1e-4, rtol=1e-4), "f32 mismatch"

    # --- Test 2: multi-row-tile path (halo via pl.Element), f32 ---------------
    H2, W2 = 32, 16
    x2 = jax.random.normal(k1, (1, C_in, H2, W2), jnp.float32)
    out2 = jax.block_until_ready(
        dsc_forward(x2, w_dw, b_dw, w_pw, b_pw, row_tile=8))
    ref2 = _reference(x2, w_dw, b_dw, w_pw, b_pw)
    assert out2.shape == (1, C_out, H2, W2), out2.shape
    assert jnp.allclose(out2, ref2, atol=1e-4, rtol=1e-4), "row-tiled mismatch"

    # --- Test 3: bf16 path (bf16 MXU operands, f32 accumulation) --------------
    xb = x.astype(jnp.bfloat16)
    wdwb, bdwb = w_dw.astype(jnp.bfloat16), b_dw.astype(jnp.bfloat16)
    wpwb, bpwb = w_pw.astype(jnp.bfloat16), b_pw.astype(jnp.bfloat16)
    outb = jax.block_until_ready(dsc_forward(xb, wdwb, bdwb, wpwb, bpwb))
    refb = _reference(xb.astype(jnp.float32), wdwb.astype(jnp.float32),
                      bdwb.astype(jnp.float32), wpwb.astype(jnp.float32),
                      bpwb.astype(jnp.float32))
    assert outb.shape == (B, C_out, H, W), outb.shape
    assert jnp.allclose(outb.astype(jnp.float32), refb,
                        atol=5e-2, rtol=5e-2), "bf16 mismatch"

    print("KERNEL_OK")
</pallas_src>

<mosaic_0001>
module attributes {stable_mosaic.version = 11 : i64} {
  func.func @_dsc_kernel(%arg0: i32, %arg1: i32, %arg2: memref<1x18x18x128xf32, #tpu.memory_space<vmem>>, %arg3: memref<3x3x128xf32, #tpu.memory_space<vmem>>, %arg4: memref<128x128xf32, #tpu.memory_space<vmem>>, %arg5: memref<1x128xf32, #tpu.memory_space<vmem>>, %arg6: memref<1x16x16x128xf32, #tpu.memory_space<vmem>>) attributes {dimension_semantics = [#tpu.dimension_semantics<parallel>, #tpu.dimension_semantics<parallel>], iteration_bounds = array<i64: 2, 1>, scalar_prefetch = 0 : i64, scratch_operands = 0 : i64, tpu.core_type = #tpu.core_type<tc>, window_params = [{transform_indices = @transform_0, window_bounds = array<i64: 1, 18, 18, 128>}, {pipeline_mode = #tpu.pipeline_mode<synchronous>, transform_indices = @transform_1, window_bounds = array<i64: 3, 3, 128>}, {pipeline_mode = #tpu.pipeline_mode<synchronous>, transform_indices = @transform_2, window_bounds = array<i64: 128, 128>}, {pipeline_mode = #tpu.pipeline_mode<synchronous>, transform_indices = @transform_3, window_bounds = array<i64: 1, 128>}, {transform_indices = @transform_4, window_bounds = array<i64: 1, 16, 16, 128>}]} {
    %cst = arith.constant 0.000000e+00 : f32
    %0 = vector.broadcast %cst : f32 to vector<16x16x128xf32>
    %c0 = arith.constant 0 : index
    %c0_0 = arith.constant 0 : index
    %c0_1 = arith.constant 0 : index
    %c0_2 = arith.constant 0 : index
    %1 = vector.load %arg2[%c0, %c0_0, %c0_1, %c0_2] : memref<1x18x18x128xf32, #tpu.memory_space<vmem>>, vector<1x18x16x128xf32>
    %2 = vector.shape_cast %1 : vector<1x18x16x128xf32> to vector<18x16x128xf32>
    %3 = vector.extract_strided_slice %2 {offsets = [0, 0, 0], sizes = [16, 16, 128], strides = [1, 1, 1]} : vector<18x16x128xf32> to vector<16x16x128xf32>
    %c0_3 = arith.constant 0 : index
    %c0_4 = arith.constant 0 : index
    %c0_5 = arith.constant 0 : index
    %4 = vector.load %arg3[%c0_3, %c0_4, %c0_5] : memref<3x3x128xf32, #tpu.memory_space<vmem>>, vector<1x1x128xf32>
    %5 = vector.shape_cast %4 : vector<1x1x128xf32> to vector<128xf32>
    %6 = vector.shape_cast %5 : vector<128xf32> to vector<1x1x128xf32>
    %7 = vector.broadcast %6 : vector<1x1x128xf32> to vector<16x16x128xf32>
    %8 = arith.mulf %3, %7 : vector<16x16x128xf32>
    %9 = arith.addf %0, %8 : vector<16x16x128xf32>
    %10 = vector.extract_strided_slice %2 {offsets = [1, 0, 0], sizes = [16, 16, 128], strides = [1, 1, 1]} : vector<18x16x128xf32> to vector<16x16x128xf32>
    %c1 = arith.constant 1 : index
    %c0_6 = arith.constant 0 : index
    %c0_7 = arith.constant 0 : index
    %11 = vector.load %arg3[%c1, %c0_6, %c0_7] : memref<3x3x128xf32, #tpu.memory_space<vmem>>, vector<1x1x128xf32>
    %12 = vector.shape_cast %11 : vector<1x1x128xf32> to vector<128xf32>
    %13 = vector.shape_cast %12 : vector<128xf32> to vector<1x1x128xf32>
    %14 = vector.broadcast %13 : vector<1x1x128xf32> to vector<16x16x128xf32>
    %15 = arith.mulf %10, %14 : vector<16x16x128xf32>
    %16 = arith.addf %9, %15 : vector<16x16x128xf32>
    %17 = vector.extract_strided_slice %2 {offsets = [2, 0, 0], sizes = [16, 16, 128], strides = [1, 1, 1]} : vector<18x16x128xf32> to vector<16x16x128xf32>
    %c2 = arith.constant 2 : index
    %c0_8 = arith.constant 0 : index
    %c0_9 = arith.constant 0 : index
    %18 = vector.load %arg3[%c2, %c0_8, %c0_9] : memref<3x3x128xf32, #tpu.memory_space<vmem>>, vector<1x1x128xf32>
    %19 = vector.shape_cast %18 : vector<1x1x128xf32> to vector<128xf32>
    %20 = vector.shape_cast %19 : vector<128xf32> to vector<1x1x128xf32>
    %21 = vector.broadcast %20 : vector<1x1x128xf32> to vector<16x16x128xf32>
    %22 = arith.mulf %17, %21 : vector<16x16x128xf32>
    %23 = arith.addf %16, %22 : vector<16x16x128xf32>
    %c0_10 = arith.constant 0 : index
    %c0_11 = arith.constant 0 : index
    %c1_12 = arith.constant 1 : index
    %c0_13 = arith.constant 0 : index
    %24 = vector.load %arg2[%c0_10, %c0_11, %c1_12, %c0_13] : memref<1x18x18x128xf32, #tpu.memory_space<vmem>>, vector<1x18x16x128xf32>
    %25 = vector.shape_cast %24 : vector<1x18x16x128xf32> to vector<18x16x128xf32>
    %26 = vector.extract_strided_slice %25 {offsets = [0, 0, 0], sizes = [16, 16, 128], strides = [1, 1, 1]} : vector<18x16x128xf32> to vector<16x16x128xf32>
    %c0_14 = arith.constant 0 : index
    %c1_15 = arith.constant 1 : index
    %c0_16 = arith.constant 0 : index
    %27 = vector.load %arg3[%c0_14, %c1_15, %c0_16] : memref<3x3x128xf32, #tpu.memory_space<vmem>>, vector<1x1x128xf32>
    %28 = vector.shape_cast %27 : vector<1x1x128xf32> to vector<128xf32>
    %29 = vector.shape_cast %28 : vector<128xf32> to vector<1x1x128xf32>
    %30 = vector.broadcast %29 : vector<1x1x128xf32> to vector<16x16x128xf32>
    %31 = arith.mulf %26, %30 : vector<16x16x128xf32>
    %32 = arith.addf %23, %31 : vector<16x16x128xf32>
    %33 = vector.extract_strided_slice %25 {offsets = [1, 0, 0], sizes = [16, 16, 128], strides = [1, 1, 1]} : vector<18x16x128xf32> to vector<16x16x128xf32>
    %c1_17 = arith.constant 1 : index
    %c1_18 = arith.constant 1 : index
    %c0_19 = arith.constant 0 : index
    %34 = vector.load %arg3[%c1_17, %c1_18, %c0_19] : memref<3x3x128xf32, #tpu.memory_space<vmem>>, vector<1x1x128xf32>
    %35 = vector.shape_cast %34 : vector<1x1x128xf32> to vector<128xf32>
    %36 = vector.shape_cast %35 : vector<128xf32> to vector<1x1x128xf32>
    %37 = vector.broadcast %36 : vector<1x1x128xf32> to vector<16x16x128xf32>
    %38 = arith.mulf %33, %37 : vector<16x16x128xf32>
    %39 = arith.addf %32, %38 : vector<16x16x128xf32>
    %40 = vector.extract_strided_slice %25 {offsets = [2, 0, 0], sizes = [16, 16, 128], strides = [1, 1, 1]} : vector<18x16x128xf32> to vector<16x16x128xf32>
    %c2_20 = arith.constant 2 : index
    %c1_21 = arith.constant 1 : index
    %c0_22 = arith.constant 0 : index
    %41 = vector.load %arg3[%c2_20, %c1_21, %c0_22] : memref<3x3x128xf32, #tpu.memory_space<vmem>>, vector<1x1x128xf32>
    %42 = vector.shape_cast %41 : vector<1x1x128xf32> to vector<128xf32>
    %43 = vector.shape_cast %42 : vector<128xf32> to vector<1x1x128xf32>
    %44 = vector.broadcast %43 : vector<1x1x128xf32> to vector<16x16x128xf32>
    %45 = arith.mulf %40, %44 : vector<16x16x128xf32>
    %46 = arith.addf %39, %45 : vector<16x16x128xf32>
    %c0_23 = arith.constant 0 : index
    %c0_24 = arith.constant 0 : index
    %c2_25 = arith.constant 2 : index
    %c0_26 = arith.constant 0 : index
    %47 = vector.load %arg2[%c0_23, %c0_24, %c2_25, %c0_26] : memref<1x18x18x128xf32, #tpu.memory_space<vmem>>, vector<1x18x16x128xf32>
    %48 = vector.shape_cast %47 : vector<1x18x16x128xf32> to vector<18x16x128xf32>
    %49 = vector.extract_strided_slice %48 {offsets = [0, 0, 0], sizes = [16, 16, 128], strides = [1, 1, 1]} : vector<18x16x128xf32> to vector<16x16x128xf32>
    %c0_27 = arith.constant 0 : index
    %c2_28 = arith.constant 2 : index
    %c0_29 = arith.constant 0 : index
    %50 = vector.load %arg3[%c0_27, %c2_28, %c0_29] : memref<3x3x128xf32, #tpu.memory_space<vmem>>, vector<1x1x128xf32>
    %51 = vector.shape_cast %50 : vector<1x1x128xf32> to vector<128xf32>
    %52 = vector.shape_cast %51 : vector<128xf32> to vector<1x1x128xf32>
    %53 = vector.broadcast %52 : vector<1x1x128xf32> to vector<16x16x128xf32>
    %54 = arith.mulf %49, %53 : vector<16x16x128xf32>
    %55 = arith.addf %46, %54 : vector<16x16x128xf32>
    %56 = vector.extract_strided_slice %48 {offsets = [1, 0, 0], sizes = [16, 16, 128], strides = [1, 1, 1]} : vector<18x16x128xf32> to vector<16x16x128xf32>
    %c1_30 = arith.constant 1 : index
    %c2_31 = arith.constant 2 : index
    %c0_32 = arith.constant 0 : index
    %57 = vector.load %arg3[%c1_30, %c2_31, %c0_32] : memref<3x3x128xf32, #tpu.memory_space<vmem>>, vector<1x1x128xf32>
    %58 = vector.shape_cast %57 : vector<1x1x128xf32> to vector<128xf32>
    %59 = vector.shape_cast %58 : vector<128xf32> to vector<1x1x128xf32>
    %60 = vector.broadcast %59 : vector<1x1x128xf32> to vector<16x16x128xf32>
    %61 = arith.mulf %56, %60 : vector<16x16x128xf32>
    %62 = arith.addf %55, %61 : vector<16x16x128xf32>
    %63 = vector.extract_strided_slice %48 {offsets = [2, 0, 0], sizes = [16, 16, 128], strides = [1, 1, 1]} : vector<18x16x128xf32> to vector<16x16x128xf32>
    %c2_33 = arith.constant 2 : index
    %c2_34 = arith.constant 2 : index
    %c0_35 = arith.constant 0 : index
    %64 = vector.load %arg3[%c2_33, %c2_34, %c0_35] : memref<3x3x128xf32, #tpu.memory_space<vmem>>, vector<1x1x128xf32>
    %65 = vector.shape_cast %64 : vector<1x1x128xf32> to vector<128xf32>
    %66 = vector.shape_cast %65 : vector<128xf32> to vector<1x1x128xf32>
    %67 = vector.broadcast %66 : vector<1x1x128xf32> to vector<16x16x128xf32>
    %68 = arith.mulf %63, %67 : vector<16x16x128xf32>
    %69 = arith.addf %62, %68 : vector<16x16x128xf32>
    %70 = vector.shape_cast %69 : vector<16x16x128xf32> to vector<256x128xf32>
    %c0_36 = arith.constant 0 : index
    %c0_37 = arith.constant 0 : index
    %71 = vector.load %arg4[%c0_36, %c0_37] : memref<128x128xf32, #tpu.memory_space<vmem>>, vector<128x128xf32>
    %cst_38 = arith.constant dense<0.000000e+00> : vector<256x128xf32>
    %72 = tpu.matmul %70, %71, %cst_38 {dimension_numbers = #tpu.dot_dimension_numbers<[1], [0], [0], [1], [0, 0, 1, 1], [], []>} : vector<256x128xf32>, vector<128x128xf32>, vector<256x128xf32> -> vector<256x128xf32>
    %c0_39 = arith.constant 0 : index
    %c0_40 = arith.constant 0 : index
    %73 = vector.load %arg5[%c0_39, %c0_40] : memref<1x128xf32, #tpu.memory_space<vmem>>, vector<1x128xf32>
    %74 = vector.shape_cast %73 : vector<1x128xf32> to vector<128xf32>
    %75 = vector.shape_cast %74 : vector<128xf32> to vector<1x128xf32>
    %76 = vector.broadcast %75 : vector<1x128xf32> to vector<256x128xf32>
    %77 = arith.addf %72, %76 : vector<256x128xf32>
    %78 = vector.shape_cast %77 : vector<256x128xf32> to vector<16x16x128xf32>
    %c0_41 = arith.constant 0 : index
    %c0_42 = arith.constant 0 : index
    %c0_43 = arith.constant 0 : index
    %c0_44 = arith.constant 0 : index
    %79 = vector.load %arg6[%c0_41, %c0_42, %c0_43, %c0_44] : memref<1x16x16x128xf32, #tpu.memory_space<vmem>>, vector<1x16x16x128xf32>
    %80 = vector.shape_cast %79 : vector<1x16x16x128xf32> to vector<16x16x128xf32>
    %81 = vector.shape_cast %78 : vector<16x16x128xf32> to vector<1x16x16x128xf32>
    tpu.vector_store %arg6[%c0_41, %c0_42, %c0_43, %c0_44], %81 {strides = array<i32>} : memref<1x16x16x128xf32, #tpu.memory_space<vmem>>, vector<1x16x16x128xf32>,
    return
  }
  func.func @transform_0(%arg0: i32, %arg1: i32) -> (i32, i32, i32, i32) {
    %c0_i32 = arith.constant 0 : i32
    %c0_i32_0 = arith.constant 0 : i32
    %c0_i32_1 = arith.constant 0 : i32
    %c0_i32_2 = arith.constant 0 : i32
    return %arg0, %c0_i32, %c0_i32_0, %c0_i32_1 : i32, i32, i32, i32
  }
  func.func @transform_1(%arg0: i32, %arg1: i32) -> (i32, i32, i32) {
    %c0_i32 = arith.constant 0 : i32
    %c0_i32_0 = arith.constant 0 : i32
    %c0_i32_1 = arith.constant 0 : i32
    %c0_i32_2 = arith.constant 0 : i32
    return %c0_i32, %c0_i32_0, %c0_i32_1 : i32, i32, i32
  }
  func.func @transform_2(%arg0: i32, %arg1: i32) -> (i32, i32) {
    %c0_i32 = arith.constant 0 : i32
    %c0_i32_0 = arith.constant 0 : i32
    %c0_i32_1 = arith.constant 0 : i32
    return %c0_i32, %c0_i32_0 : i32, i32
  }
  func.func @transform_3(%arg0: i32, %arg1: i32) -> (i32, i32) {
    %c0_i32 = arith.constant 0 : i32
    %c0_i32_0 = arith.constant 0 : i32
    %c0_i32_1 = arith.constant 0 : i32
    return %c0_i32, %c0_i32_0 : i32, i32
  }
  func.func @transform_4(%arg0: i32, %arg1: i32) -> (i32, i32, i32, i32) {
    %c0_i32 = arith.constant 0 : i32
    %c0_i32_0 = arith.constant 0 : i32
    %c0_i32_1 = arith.constant 0 : i32
    return %arg0, %arg1, %c0_i32, %c0_i32_0 : i32, i32, i32, i32
  }
}

</mosaic_0001>

<bundles_post_ra>
// kernel: tpu_custom_call.1
= control target key start
LH: loop header
LB: loop body
LE: loop exit
PB: predicated region body
PF: predicated region fallthrough
CT: control target
= control target key end

     0   :  { %9 = vsyncpa [#allocation3], 0  ;;  %s2926_s0 = inlined_call_operand.vmem [shape: f32[2,18,18,128], index: 0, kind: input, shape index: {}]   ;;  %s2927_s1 = inlined_call_operand.vmem [shape: f32[3,3,128], index: 1, kind: input, shape index: {}]   ;;  %s2928_s2 = inlined_call_operand.vmem [shape: f32[128,128], index: 2, kind: input, shape index: {}]   ;;  %s2929_s3 = inlined_call_operand.vmem [shape: f32[1,128], index: 3, kind: input, shape index: {}]   ;;  %s2930_s4 = inlined_call_operand.hbm [shape: f32[2,16,16,128], index: 4, kind: output, shape index: {}]  }
   0x1   :  { %11 = vsyncpa [#allocation3 + $0x1], 0  ;;  %s1704_s15 = smov 0   ;;  %s1706_s16 = smov 0  }
   0x2   :  { %s1708_s17 = smov 0   ;;  %s1710_s18 = smov 0  }
   0x3   :  { %s1712_s19 = smov 0   ;;  %s1714_s20 = smov 0  }
   0x4 LB: > { %s1312_s21 = sadd.s32 4294967295, %s1674_s20   ;;  %s1313_s22 = sadd.s32 4294967294, %s1674_s20   ;;  %s1674_s20 = sphi %s1714_s20, %s17_s20   ;;  %s1670_s19 = sphi %s1712_s19, %s2949_s19   ;;  %s1666_s18 = sphi %s1710_s18, %s2948_s18   ;;  %s1662_s17 = sphi %s1708_s17, %s2947_s17   ;;  %s1658_s16 = sphi %s1706_s16, %s2946_s16   ;;  %s1654_s15 = sphi %s1704_s15, %s2945_s15  }
   0x5   : > { %s29_s23 = sadd.s32 1, %s1670_s19  ;;  %s127_s24 = sadd.s32 1, %s1662_s17 }
   0x6   : > { %p31_p0 = scmp.ge.s32.totalorder %s29_s23, 2  ;;  %p137_p1 = scmp.ne.s32.totalorder %s1662_s17, %s1658_s16 }
   0x7   : > { %p138_p2 = scmp.eq.s32.totalorder %s1312_s21, 1  ;;  %p143_p3 = scmp.ne.s32.totalorder %s1658_s16, %s1654_s15 }
   0x8   : > { %s2951_s23 = smov (%p31_p0, %s29_s23), 0  ;;  %p144_p5 = scmp.eq.s32.totalorder %s1313_s22, 1 }
   0x9   : > { %p1744_p4 = por %p138_p2, %p137_p1  ;;  %s122_s26 = ssub.s32 %s1670_s19, %s2951_s23 }
   0xa   : > { %p1316_p6 = scmp.ge.s32.totalorder %s1674_s20, 1  ;;  %p125_p7 = scmp.eq.s32.totalorder %s122_s26, 0 }
   0xb   : > { %p1751_p8 = por %p144_p5, %p143_p3  ;;  %p179_p9 = scmp.lt.s32.totalorder %s1674_s20, 3 }
   0xc   : > { %s1757_s28 = scalar_select %p125_p7, %s1662_s17, %s127_s24  }
   0xd   : > { %p180_p10 = pnand %p1316_p6, %p179_p9 }
   0xf   : > { %183 = sbr.rel (%p180_p10) target bundleno = 408 (0x198), region = 36 }
  0x16   : > { %v942_v0 = vld [vmem:[%s2928_s2] sm:$0xff]  ;;  %v943_v1 = vld [vmem:[%s2928_s2 + $0x8] sm:$0xff]  ;;  %v944_v2 = vld [vmem:[%s2928_s2 + $0x10] sm:$0xff]  ;;  %p205_p11 = scmp.lt.s32.totalorder %s1666_s18, 1  ;;  %s1340_s26 = sshll.u32 %s1666_s18, 12 }
  0x17   : > { %v1469_v3 = vpack.c.bf16 %v943_v1, %v942_v0  ;;  %v945_v4 = vld [vmem:[%s2928_s2 + $0x18] sm:$0xff]  ;;  %v946_v6 = vld [vmem:[%s2928_s2 + $0x20] sm:$0xff]  ;;  %v947_v7 = vld [vmem:[%s2928_s2 + $0x28] sm:$0xff]  ;;  %s2871_s6 = scalar_lea.hbm %s2930_s4, %s1340_s26  ;;  %s1676_s9 = smov [#allocation2]  }
  0x18   : > { %v1473_v5 = vpack.c.bf16 %v945_v4, %v944_v2  ;;  %s206_s21 = scalar_select %p205_p11, %s1666_s18, 1  ;;  %v948_v8 = vld [vmem:[%s2928_s2 + $0x30] sm:$0xff]  ;;  %v949_v9 = vld [vmem:[%s2928_s2 + $0x38] sm:$0xff]  ;;  %v950_v10 = vld [vmem:[%s2928_s2 + $0x40] sm:$0xff]  ;;  %v1477_v12 = vpack.c.bf16 %v947_v7, %v946_v6 }
  0x19   : > { %1470 = vmatprep.subr.bf16.mxu0 %v1469_v3  ;;  %1501 = vmatprep.subr.bf16.mxu1 %v1469_v3  ;;  %v951_v11 = vld [vmem:[%s2928_s2 + $0x48] sm:$0xff]  ;;  %v952_v13 = vld [vmem:[%s2928_s2 + $0x50] sm:$0xff]  ;;  %v953_v14 = vld [vmem:[%s2928_s2 + $0x58] sm:$0xff]  ;;  %v1481_v25 = vpack.c.bf16 %v949_v9, %v948_v8  ;;  %s1600_s11 = sshll.u32 %s1676_s9, 4  ;;  %s1601_s11 = int_to_ptr.vmem [resolvable:$false] %s1600_s11 }
  0x1a   : > { %1472 = vmatpush3.bf16.msra.mxu0 %v1469_v3  ;;  %1509 = vmatpush3.bf16.msra.mxu1 %v1469_v3  ;;  %s1517_s8 = smul.u32 432, %s206_s21  ;;  %v954_v15 = vld [vmem:[%s2928_s2 + $0x60] sm:$0xff]  ;;  %v955_v16 = vld [vmem:[%s2928_s2 + $0x68] sm:$0xff]  ;;  %v956_v17 = vld [vmem:[%s2928_s2 + $0x70] sm:$0xff]  ;;  %v1839_v29 = vpack.c.bf16 %v951_v11, %v950_v10  ;;  %v1849_v34 = vpack.c.bf16 %v953_v14, %v952_v13  ;;  %s1602_s12 = scalar_lea.vmem %s1601_s11, 8192 }
  0x1b   : > { %1474 = vmatprep.subr.bf16.mxu0 %v1473_v5  ;;  %1502 = vmatprep.subr.bf16.mxu1 %v1473_v5  ;;  %v1809_v18 = vld [vmem:[%s2927_s1] ss:$0 sm:$0xff]  ;;  %v957_v19 = vld [vmem:[%s2928_s2 + $0x78] sm:$0xff]  ;;  %v1822_v20 = vld [vmem:[%s2927_s1 + $0x4] ss:$0 sm:$0xff]  ;;  %v1851_v35 = vpack.c.bf16 %v955_v16, %v954_v15 }
  0x1c   : > { %s1817_s10 = scalar_lea.vmem %s2926_s0, %s1517_s8  ;;  %v1827_v21 = vld [vmem:[%s2927_s1 + $0x8] ss:$0 sm:$0xff]  ;;  %v1837_v28 = vld [vmem:[%s2927_s1 + $0x1] ss:$0 sm:$0xff]  ;;  %v1847_v33 = vld [vmem:[%s2927_s1 + $0x5] ss:$0 sm:$0xff]  ;;  %v1853_v36 = vpack.c.bf16 %v957_v19, %v956_v17 }
  0x1d   : > { %v211_v22 = vld [vmem:[%s1817_s10] sm:$0xff]  ;;  %v213_v23 = vld [vmem:[%s1817_s10 + $0x18] sm:$0xff]  ;;  %v215_v24 = vld [vmem:[%s1817_s10 + $0x30] sm:$0xff]  ;;  %s202_s8 = sand.u32 1, %s1658_s16  }
  0x1e   : > { %1476 = vmatpush3.bf16.msra.mxu0 %v1473_v5  ;;  %1510 = vmatpush3.bf16.msra.mxu1 %v1473_v5  ;;  %v252_v26 = vmul.f32 %v1809_v18, %v211_v22  ;;  %v456_v27 = vld [vmem:[%s1817_s10 + $0x1] sm:$0xff]  ;;  %v322_v30 = vmul.f32 %v1822_v20, %v213_v23  ;;  %v392_v31 = vmul.f32 %v1827_v21, %v215_v24  ;;  %v458_v32 = vld [vmem:[%s1817_s10 + $0x19] sm:$0xff]  ;;  %v460_v38 = vld [vmem:[%s1817_s10 + $0x31] sm:$0xff]  ;;  %s1317_s22 = sshll.u32 %s202_s8, 8  ;;  %s2880_s18 = scalar_lea.sflag [#allocation3], %s202_s8 }
  0x1f   : > { %1478 = vmatprep.subr.bf16.mxu0 %v1477_v12  ;;  %1503 = vmatprep.subr.bf16.mxu1 %v1477_v12  ;;  %v1856_v37 = vmul.f32 %v1809_v18, %v213_v23  ;;  %v1862_v39 = vld [vmem:[%s2927_s1 + $0x9] ss:$0 sm:$0xff]  ;;  %v1866_v41 = vmul.f32 %v1809_v18, %v215_v24  ;;  %v1869_v42 = vmul.f32 %v1822_v20, %v215_v24  ;;  %v1875_v45 = vld [vmem:[%s2927_s1 + $0x2] ss:$0 sm:$0xff]  ;;  %v1879_v47 = vld [vmem:[%s1817_s10 + $0xd8] sm:$0xff] }
  0x20   : > { %v699_v40 = vld [vmem:[%s1817_s10 + $0x2] sm:$0xff]  ;;  %v354_v43 = vadd.f32 %v322_v30, %v252_v26  ;;  %v497_v44 = vmul.f32 %v1837_v28, %v456_v27  ;;  %v1882_v48 = vmul.f32 %v1837_v28, %v458_v32  ;;  %v1885_v49 = vmul.f32 %v1837_v28, %v460_v38  ;;  %v701_v51 = vld [vmem:[%s1817_s10 + $0x1a] sm:$0xff]  ;;  %v231_v53 = vld [vmem:[%s1817_s10 + $0xf0] sm:$0xff] }
  0x21   : > { %v227_v46 = vld [vmem:[%s1817_s10 + $0xc0] sm:$0xff]  ;;  %v566_v50 = vmul.f32 %v1847_v33, %v458_v32  ;;  %v1896_v55 = vmul.f32 %v1847_v33, %v460_v38  ;;  %v635_v56 = vmul.f32 %v1862_v39, %v460_v38  ;;  %v703_v58 = vld [vmem:[%s1817_s10 + $0x32] sm:$0xff]  ;;  %v740_v59 = vmul.f32 %v1875_v45, %v699_v40  ;;  %v1908_v61 = vld [vmem:[%s2927_s1 + $0xa] ss:$0 sm:$0xff] }
  0x22   : > { %1480 = vmatpush3.bf16.msra.mxu0 %v1477_v12  ;;  %1511 = vmatpush3.bf16.msra.mxu1 %v1477_v12  ;;  %v1892_v52 = vld [vmem:[%s2927_s1 + $0x6] ss:$0 sm:$0xff]  ;;  %v424_v54 = vadd.f32 %v392_v31, %v354_v43  ;;  %v1903_v60 = vmul.f32 %v1875_v45, %v701_v51  ;;  %v268_v62 = vmul.f32 %v1809_v18, %v227_v46  ;;  %v474_v4 = vld [vmem:[%s1817_s10 + $0xd9] sm:$0xff]  ;;  %v476_v7 = vld [vmem:[%s1817_s10 + $0xf1] sm:$0xff] }
  0x23   : > { %1482 = vmatprep.subr.bf16.mxu0 %v1481_v25  ;;  %1504 = vmatprep.subr.bf16.mxu1 %v1481_v25  ;;  %v472_v57 = vld [vmem:[%s1817_s10 + $0xc1] sm:$0xff]  ;;  %v338_v63 = vmul.f32 %v1822_v20, %v1879_v47  ;;  %v1914_v1 = vmul.f32 %v1875_v45, %v703_v58  ;;  %v809_v2 = vmul.f32 %v1892_v52, %v701_v51  ;;  %v1945_v22 = vld [vmem:[%s1817_s10 + $0x38] sm:$0xff]  ;;  %v457_v27 = vld [vmem:[%s1817_s10 + $0x9] sm:$0xff] }
  0x24   : > { %v529_v0 = vadd.f32 %v497_v44, %v424_v54  ;;  %v408_v3 = vmul.f32 %v1827_v21, %v231_v53  ;;  %v1920_v5 = vmul.f32 %v1892_v52, %v703_v58  ;;  %v513_v8 = vmul.f32 %v1837_v28, %v472_v57  ;;  %v212_v12 = vld [vmem:[%s1817_s10 + $0x8] sm:$0xff]  ;;  %v1932_v13 = vld [vmem:[%s1817_s10 + $0x20] sm:$0xff]  ;;  %v1974_v51 = vld [vmem:[%s1817_s10 + $0xf2] sm:$0xff] }
  0x25   : > { %v370_v6 = vadd.f32 %v338_v63, %v268_v62  ;;  %v878_v10 = vmul.f32 %v1908_v61, %v703_v58  ;;  %v1928_v11 = vmul.f32 %v1809_v18, %v231_v53  ;;  %v1935_v14 = vmul.f32 %v1822_v20, %v231_v53  ;;  %v1942_v19 = vld [vmem:[%s1817_s10 + $0xc2] sm:$0xff]  ;;  %v717_v31 = vld [vmem:[%s1817_s10 + $0xda] sm:$0xff] }
  0x26   : > { %1484 = vmatpush3.bf16.msra.mxu0 %v1481_v25  ;;  %1512 = vmatpush3.bf16.msra.mxu1 %v1481_v25  ;;  %v598_v9 = vadd.f32 %v566_v50, %v529_v0  ;;  %v1938_v16 = vmul.f32 %v1837_v28, %v474_v4  ;;  %v582_v17 = vmul.f32 %v1847_v33, %v474_v4  ;;  %v1962_v40 = vld [vmem:[%s1817_s10 + $0x21] sm:$0xff]  ;;  %v1984_v58 = vld [vmem:[%s1817_s10 + $0xf8] sm:$0xff] }
  0x27   : > { %1486 = vmatprep.subr.bf16.mxu0 %v1839_v29  ;;  %1505 = vmatprep.subr.bf16.mxu1 %v1839_v29  ;;  %v440_v15 = vadd.f32 %v408_v3, %v370_v6  ;;  %2937 = vst [vmem:[#allocation5_spill] sm:$0xff] %v1942_v19  ;;  %v1948_v24 = vmul.f32 %v1837_v28, %v476_v7  ;;  %v1971_v46 = vld [vmem:[%s1817_s10 + $0xc8] sm:$0xff]  ;;  %v1981_v57 = vld [vmem:[%s1817_s10 + $0xe0] sm:$0xff] }
  0x28   : > { %v667_v23 = vadd.f32 %v635_v56, %v598_v9  ;;  %v1951_v25 = vmul.f32 %v1847_v33, %v476_v7  ;;  %v651_v26 = vmul.f32 %v1862_v39, %v476_v7  ;;  %v253_v32 = vmul.f32 %v1809_v18, %v212_v12  ;;  %2938 = vst [vmem:[#allocation6_spill] sm:$0xff] %v1971_v46  ;;  %v1992_v0 = vld [vmem:[%s1817_s10 + $0x39] sm:$0xff]  ;;  %v2000_v7 = vld [vmem:[%s1817_s10 + $0x22] sm:$0xff] }
  0x29   : > { %v545_v30 = vadd.f32 %v513_v8, %v440_v15  ;;  %v323_v38 = vmul.f32 %v1822_v20, %v1932_v13  ;;  %v393_v44 = vmul.f32 %v1827_v21, %v1945_v22  ;;  %v1977_v53 = vmul.f32 %v1875_v45, %v717_v31  ;;  %v2005_v9 = vld [vmem:[%s1817_s10 + $0xc9] sm:$0xff] }
  0x2a   : > { %1488 = vmatpush3.bf16.msra.mxu0 %v1839_v29  ;;  %1513 = vmatpush3.bf16.msra.mxu1 %v1839_v29  ;;  %v772_v43 = vadd.f32 %v740_v59, %v667_v23  ;;  %v756_v29 = vmul.f32 %v1875_v45, %v1942_v19  ;;  %v498_v56 = vmul.f32 %v1837_v28, %v457_v27  ;;  %v2106_v19 = vld [vmem:[%s1817_s10 + $0x51] sm:$0xff] }
  0x2b   : > { %1490 = vmatprep.subr.bf16.mxu0 %v1849_v34  ;;  %1506 = vmatprep.subr.bf16.mxu1 %v1849_v34  ;;  %v614_v50 = vadd.f32 %v582_v17, %v545_v30  ;;  %v355_v54 = vadd.f32 %v323_v38, %v253_v32  ;;  %v825_v62 = vmul.f32 %v1892_v52, %v717_v31  ;;  %v2014_v17 = vld [vmem:[%s1817_s10 + $0xe1] sm:$0xff] }
  0x2c   : > { %v841_v59 = vadd.f32 %v809_v2, %v772_v43  ;;  %v1989_v63 = vmul.f32 %v1892_v52, %v1974_v51  ;;  %v567_v3 = vmul.f32 %v1847_v33, %v1962_v40  ;;  %v700_v2 = vld [vmem:[%s1817_s10 + $0xa] sm:$0xff]  ;;  %v269_v8 = vmul.f32 %v1809_v18, %v1971_v46  ;;  %2939 = vst [vmem:[#allocation7_spill] sm:$0xff] %v2005_v9 }
  0x2d   : > { %v683_v4 = vadd.f32 %v651_v26, %v614_v50  ;;  %v425_v6 = vadd.f32 %v393_v44, %v355_v54  ;;  %v409_v15 = vmul.f32 %v1827_v21, %v1984_v58  ;;  %v894_v26 = vmul.f32 %v1908_v61, %v1974_v51  ;;  %v2021_v31 = vld [vmem:[%s1817_s10 + $0x48] sm:$0xff] }
  0x2e   : > { %1492 = vmatpush3.bf16.msra.mxu0 %v1849_v34  ;;  %1514 = vmatpush3.bf16.msra.mxu1 %v1849_v34  ;;  %v910_v12 = vadd.f32 %v878_v10, %v841_v59  ;;  %v339_v34 = vmul.f32 %v1822_v20, %v1981_v57  ;;  %v636_v30 = vmul.f32 %v1862_v39, %v1992_v0  ;;  %v2024_v10 = vld [vmem:[%s1817_s10 + $0x3a] sm:$0xff]  ;;  %v2039_v59 = vld [vmem:[%s1817_s10 + $0x108] sm:$0xff] }
  0x2f   : > { %1494 = vmatprep.subr.bf16.mxu0 %v1851_v35  ;;  %1507 = vmatprep.subr.bf16.mxu1 %v1851_v35  ;;  %v788_v23 = vadd.f32 %v756_v29, %v683_v4  ;;  %v530_v27 = vadd.f32 %v498_v56, %v425_v6  ;;  %v741_v32 = vmul.f32 %v1875_v45, %v700_v2  ;;  %v2030_v29 = vld [vmem:[%s1817_s10 + $0xf9] sm:$0xff]  ;;  %v2044_v6 = vld [vmem:[%s1817_s10 + $0xca] sm:$0xff] }
  0x30   : > { %1421 = vmatprep.mubr.f32.mxu0 %v910_v12  ;;  %v810_v38 = vmul.f32 %v1892_v52, %v2000_v7  ;;  %v371_v43 = vadd.f32 %v339_v34, %v269_v8  ;;  %v514_v44 = vmul.f32 %v1837_v28, %v2005_v9  ;;  %v583_v56 = vmul.f32 %v1847_v33, %v2014_v17 }
  0x31   : > { %v857_v50 = vadd.f32 %v825_v62, %v788_v23  ;;  %v599_v54 = vadd.f32 %v567_v3, %v530_v27  ;;  %2940 = vst [vmem:[#allocation8_spill] sm:$0xff] %v2044_v6  ;;  %v356_v2 = vadd.f32 %v1869_v42, %v1856_v37  ;;  %v2051_v62 = vld [vmem:[%s1817_s10 + $0x49] sm:$0xff]  ;;  %v879_v12 = vmul.f32 %v1908_v61, %v2024_v10 }
  0x32   : > { %1496 = vmatpush3.bf16.msra.mxu0 %v1851_v35  ;;  %1515 = vmatpush3.bf16.msra.mxu1 %v1851_v35  ;;  %v441_v4 = vadd.f32 %v409_v15, %v371_v43  ;;  %v394_v35 = vmul.f32 %v1827_v21, %v2021_v31  ;;  %v652_v34 = vmul.f32 %v1862_v39, %v2030_v29  ;;  %v2058_v23 = vld [vmem:[%s1817_s10 + $0xe2] sm:$0xff]  ;;  %v2070_v43 = vld [vmem:[%s1817_s10 + $0xfa] sm:$0xff] }
  0x33   : > { %1498 = vmatprep.subr.bf16.mxu0 %v1853_v36  ;;  %1508 = vmatprep.subr.bf16.mxu1 %v1853_v36  ;;  %v926_v3 = vadd.f32 %v894_v26, %v857_v50  ;;  %v668_v8 = vadd.f32 %v636_v30, %v599_v54  ;;  %v270_v37 = vmul.f32 %v1809_v18, %v1879_v47  ;;  %v2065_v26 = vld [vmem:[%s1817_s10 + $0x50] sm:$0xff] }
  0x34   : > { %v546_v15 = vadd.f32 %v514_v44, %v441_v4  ;;  %v426_v27 = vadd.f32 %v394_v35, %v356_v2  ;;  %v410_v42 = vmul.f32 %v1827_v21, %v2039_v59  ;;  %v757_v44 = vmul.f32 %v1875_v45, %v2044_v6  ;;  %v2078_v4 = vld [vmem:[%s1817_s10 + $0x4a] sm:$0xff] }
  0x35   : > { %v773_v30 = vadd.f32 %v741_v32, %v668_v8  ;;  %v637_v50 = vmul.f32 %v1862_v39, %v2051_v62  ;;  %1445 = vmatprep.mubr.f32.mxu1 %v926_v3  ;;  %v372_v2 = vadd.f32 %v1935_v14, %v270_v37  ;;  %v826_v35 = vmul.f32 %v1892_v52, %v2058_v23  ;;  %v2086_v8 = vld [vmem:[%s1817_s10 + $0x109] sm:$0xff] }
  0x36   : > { %1500 = vmatpush3.bf16.msra.mxu0 %v1853_v36  ;;  %1516 = vmatpush3.bf16.msra.mxu1 %v1853_v36  ;;  %v615_v47 = vadd.f32 %v583_v56, %v546_v15  ;;  %v531_v54 = vadd.f32 %v1882_v48, %v426_v27  ;;  %v255_v36 = vmul.f32 %v1809_v18, %v1932_v13  ;;  %v2100_v6 = vld [vmem:[%s1817_s10 + $0x110] sm:$0xff] }
  0x37   : > { %v842_v32 = vadd.f32 %v810_v38, %v773_v30  ;;  %v325_v56 = vmul.f32 %v1822_v20, %v1945_v22  ;;  %v395_v48 = vmul.f32 %v1827_v21, %v2065_v26  ;;  %v895_v14 = vmul.f32 %v1908_v61, %v2070_v43 }
  0x38   : > { %v684_v3 = vadd.f32 %v652_v34, %v615_v47  ;;  %v600_v13 = vadd.f32 %v1896_v55, %v531_v54  ;;  %v442_v38 = vadd.f32 %v410_v42, %v372_v2  ;;  %v880_v27 = vmul.f32 %v1908_v61, %v2078_v4  ;;  %v2109_v55 = vld [vmem:[%s1817_s10 + $0x10a] sm:$0xff] }
  0x39   : > { %v911_v15 = vadd.f32 %v879_v12, %v842_v32  ;;  %v357_v37 = vadd.f32 %v325_v56, %v255_v36  ;;  %v500_v30 = vmul.f32 %v1837_v28, %v1962_v40  ;;  %v653_v47 = vmul.f32 %v1862_v39, %v2086_v8 }
  0x3a   : > { %v789_v9 = vadd.f32 %v757_v44, %v684_v3  ;;  %v669_v46 = vadd.f32 %v637_v50, %v600_v13  ;;  %v547_v34 = vadd.f32 %v1938_v16, %v442_v38  ;;  %v569_v42 = vmul.f32 %v1847_v33, %v1992_v0 }
  0x3b   : > { %1422 = vmatmul.mubr.f32.vlgmr.msra.gmra.mrb[0].mxu0 %v911_v15  ;;  %v427_v12 = vadd.f32 %v395_v48, %v357_v37  ;;  %v271_v40 = vmul.f32 %v1809_v18, %v1981_v57  ;;  %v341_v16 = vmul.f32 %v1822_v20, %v1984_v58  ;;  %v411_v2 = vmul.f32 %v1827_v21, %v2100_v6 }
  0x3c   : > { %v858_v44 = vadd.f32 %v826_v35, %v789_v9  ;;  %v774_v50 = vadd.f32 %v1903_v60, %v669_v46  ;;  %v616_v54 = vadd.f32 %v1951_v25, %v547_v34  ;;  %v638_v32 = vmul.f32 %v1862_v39, %v2106_v19  ;;  %v2129_v46 = vld [vmem:[%s1817_s10 + $0x111] sm:$0xff]  ;;  %v2132_v25 = vld [vmem:[%s1817_s10 + $0x60] sm:$0xff] }
  0x3d   : > { %v532_v36 = vadd.f32 %v500_v30, %v427_v12  ;;  %v373_v56 = vadd.f32 %v341_v16, %v271_v40  ;;  %v516_v57 = vmul.f32 %v1837_v28, %v2014_v17  ;;  %v896_v60 = vmul.f32 %v1908_v61, %v2109_v55  ;;  %v2135_v35 = vld [vmem:[%s1817_s10 + $0x52] sm:$0xff] }
  0x3e   : > { %v927_v48 = vadd.f32 %v895_v14, %v858_v44  ;;  %v843_v3 = vadd.f32 %v1920_v5, %v774_v50  ;;  %v685_v13 = vadd.f32 %v653_v47, %v616_v54  ;;  %v743_v38 = vmul.f32 %v1875_v45, %v2000_v7  ;;  %v2157_v40 = vld [vmem:[%s1817_s10 + $0x112] sm:$0xff] }
  0x3f   : > { %v601_v9 = vadd.f32 %v569_v42, %v532_v36  ;;  %v443_v17 = vadd.f32 %v411_v2, %v373_v56  ;;  %v585_v5 = vmul.f32 %v1847_v33, %v2030_v29  ;;  %v812_v37 = vmul.f32 %v1892_v52, %v2024_v10  ;;  %v2151_v42 = vld [vmem:[%s1817_s10 + $0x120] sm:$0xff] }
  0x40   : > { %1446 = vmatmul.mubr.f32.vlgmr.msra.gmra.mrb[0].mxu1 %v927_v48  ;;  %v912_v14 = vadd.f32 %v880_v27, %v843_v3  ;;  %v790_v15 = vadd.f32 %v1977_v53, %v685_v13  ;;  %v326_v30 = vmul.f32 %v1822_v20, %v2021_v31  ;;  %v654_v7 = vmul.f32 %v1862_v39, %v2129_v46  ;;  %v2165_v36 = vld [vmem:[%s1817_s10 + $0x61] sm:$0xff] }
  0x41   : > { %v670_v34 = vadd.f32 %v638_v32, %v601_v9  ;;  %v548_v47 = vadd.f32 %v516_v57, %v443_v17  ;;  %v396_v12 = vmul.f32 %v1827_v21, %v2132_v25  ;;  %v881_v27 = vmul.f32 %v1908_v61, %v2135_v35  ;;  %v2177_v9 = vld [vmem:[%s1817_s10 + $0x121] sm:$0xff] }
  0x42   : > { %1424 = vmatprep.mubr.f32.mxu0 %v912_v14  ;;  %v859_v53 = vadd.f32 %v1989_v63, %v790_v15  ;;  %v759_v16 = vmul.f32 %v1875_v45, %v2058_v23  ;;  %v358_v44 = vadd.f32 %v326_v30, %v1866_v41  ;;  %v828_v2 = vmul.f32 %v1892_v52, %v2070_v43 }
  0x43   : > { %v775_v50 = vadd.f32 %v743_v38, %v670_v34  ;;  %v617_v54 = vadd.f32 %v585_v5, %v548_v47  ;;  %v342_v63 = vmul.f32 %v1822_v20, %v2039_v59  ;;  %v570_v57 = vmul.f32 %v1847_v33, %v2051_v62  ;;  %v2180_v38 = vld [vmem:[%s1817_s10 + $0x68] sm:$0xff] }
  0x44   : > { %v928_v32 = vadd.f32 %v896_v60, %v859_v53  ;;  %v428_v56 = vadd.f32 %v396_v12, %v358_v44  ;;  %v412_v23 = vmul.f32 %v1827_v21, %v2151_v42  ;;  %v897_v3 = vmul.f32 %v1908_v61, %v2157_v40  ;;  %v2204_v44 = vld [vmem:[%s1817_s10 + $0x128] sm:$0xff] }
  0x45   : > { %v844_v41 = vadd.f32 %v812_v37, %v775_v50  ;;  %v686_v48 = vadd.f32 %v654_v7, %v617_v54  ;;  %v374_v13 = vadd.f32 %v342_v63, %v1928_v11  ;;  %v639_v17 = vmul.f32 %v1862_v39, %v2165_v36  ;;  %v2190_v11 = vld [vmem:[%s1817_s10 + $0x62] sm:$0xff] }
  0x46   : > { %1448 = vmatprep.mubr.f32.mxu1 %v928_v32  ;;  %v533_v60 = vadd.f32 %v1885_v49, %v428_v56  ;;  %v586_v5 = vmul.f32 %v1847_v33, %v2086_v8  ;;  %v257_v14 = vmul.f32 %v1809_v18, %v1945_v22  ;;  %v327_v49 = vmul.f32 %v1822_v20, %v2065_v26  ;;  %v2211_v63 = vld [vmem:[%s1817_s10 + $0x122] sm:$0xff] }
  0x47   : > { %v913_v15 = vadd.f32 %v881_v27, %v844_v41  ;;  %v791_v37 = vadd.f32 %v759_v16, %v686_v48  ;;  %v444_v30 = vadd.f32 %v412_v23, %v374_v13  ;;  %v760_v34 = vmul.f32 %v1875_v45, %v1974_v51  ;;  %v2214_v32 = vld [vmem:[%s1817_s10 + $0x69] sm:$0xff] }
  0x48   : > { %v602_v47 = vadd.f32 %v570_v57, %v533_v60  ;;  %v655_v7 = vmul.f32 %v1862_v39, %v2177_v9  ;;  %v397_v22 = vmul.f32 %v1827_v21, %v2180_v38  ;;  %v359_v27 = vadd.f32 %v327_v49, %v257_v14  ;;  %v2235_v14 = vld [vmem:[%s1817_s10 + $0x6a] sm:$0xff] }
  0x49   : > { %1425 = vmatmul.mubr.f32.gmra.mrb[2].mxu0 %v913_v15  ;;  %v860_v12 = vadd.f32 %v828_v2, %v791_v37  ;;  %v549_v53 = vadd.f32 %v1948_v24, %v444_v30  ;;  %v502_v16 = vmul.f32 %v1837_v28, %v1992_v0  ;;  %v813_v51 = vmul.f32 %v1892_v52, %v2078_v4 }
  0x4a   : > { %v671_v50 = vadd.f32 %v639_v17, %v602_v47  ;;  %v882_v54 = vmul.f32 %v1908_v61, %v2190_v11  ;;  %v571_v24 = vmul.f32 %v1847_v33, %v2106_v19  ;;  %v429_v56 = vadd.f32 %v397_v22, %v359_v27 }
  0x4b   : > { %v929_v2 = vadd.f32 %v897_v3, %v860_v12  ;;  %v618_v0 = vadd.f32 %v586_v5, %v549_v53  ;;  %v273_v57 = vmul.f32 %v1809_v18, %v1984_v58  ;;  %v829_v41 = vmul.f32 %v1892_v52, %v2109_v55 }
  0x4c   : > { %v776_v23 = vadd.f32 %v1914_v1, %v671_v50  ;;  %v343_v48 = vmul.f32 %v1822_v20, %v2100_v6  ;;  %v413_v13 = vmul.f32 %v1827_v21, %v2204_v44  ;;  %v898_v3 = vmul.f32 %v1908_v61, %v2211_v63  ;;  %v2232_v1 = vld [vmem:[%s1817_s10 + $0x78] sm:$0xff] }
  0x4d   : > { %1449 = vmatmul.mubr.f32.gmra.mrb[2].mxu1 %v929_v2  ;;  %v687_v60 = vadd.f32 %v655_v7, %v618_v0  ;;  %v534_v17 = vadd.f32 %v502_v16, %v429_v56  ;;  %v640_v58 = vmul.f32 %v1862_v39, %v2214_v32  ;;  %v745_v15 = vmul.f32 %v1875_v45, %v2024_v10  ;;  %v2242_v7 = vld [vmem:[%s1817_s10 + $0x129] sm:$0xff]  ;;  %v2259_v2 = vld [vmem:[%s1817_s10 + $0x79] sm:$0xff] }
  0x4e   : > { %v845_v5 = vadd.f32 %v813_v51, %v776_v23  ;;  %v375_v37 = vadd.f32 %v343_v48, %v273_v57  ;;  %v518_v30 = vmul.f32 %v1837_v28, %v2030_v29  ;;  %v587_v22 = vmul.f32 %v1847_v33, %v2129_v46  ;;  %v2264_v56 = vld [vmem:[%s1817_s10 + $0x138] sm:$0xff] }
  0x4f   : > { %v792_v49 = vadd.f32 %v760_v34, %v687_v60  ;;  %v603_v47 = vadd.f32 %v571_v24, %v534_v17  ;;  %v258_v12 = vmul.f32 %v1809_v18, %v2021_v31  ;;  %v328_v10 = vmul.f32 %v1822_v20, %v2132_v25  ;;  %v2271_v60 = vld [vmem:[%s1817_s10 + $0x12a] sm:$0xff] }
  0x50   : > { %v914_v53 = vadd.f32 %v882_v54, %v845_v5  ;;  %v445_v27 = vadd.f32 %v413_v13, %v375_v37  ;;  %v398_v29 = vmul.f32 %v1827_v21, %v2232_v1  ;;  %v814_v50 = vmul.f32 %v1892_v52, %v2135_v35 }
  0x51   : > { %v861_v34 = vadd.f32 %v829_v41, %v792_v49  ;;  %v672_v16 = vadd.f32 %v640_v58, %v603_v47  ;;  %v883_v51 = vmul.f32 %v1908_v61, %v2235_v14  ;;  %v656_v31 = vmul.f32 %v1862_v39, %v2242_v7  ;;  %v2284_v49 = vld [vmem:[%s1817_s10 + $0x7a] sm:$0xff] }
  0x52   : > { %1427 = vmatprep.mubr.f32.mxu0 %v914_v53  ;;  %v550_v24 = vadd.f32 %v518_v30, %v445_v27  ;;  %v360_v54 = vadd.f32 %v328_v10, %v258_v12  ;;  %v503_v0 = vmul.f32 %v1837_v28, %v2051_v62  ;;  %v761_v41 = vmul.f32 %v1875_v45, %v2070_v43  ;;  %v2296_v10 = vld [vmem:[%s1817_s10 + $0x139] sm:$0xff] }
  0x53   : > { %v930_v57 = vadd.f32 %v898_v3, %v861_v34  ;;  %v777_v23 = vadd.f32 %v745_v15, %v672_v16  ;;  %v572_v48 = vmul.f32 %v1847_v33, %v2165_v36  ;;  %v274_v58 = vmul.f32 %v1809_v18, %v2039_v59 }
  0x54   : > { %v619_v13 = vadd.f32 %v587_v22, %v550_v24  ;;  %v430_v17 = vadd.f32 %v398_v29, %v360_v54  ;;  %v344_v62 = vmul.f32 %v1822_v20, %v2151_v42  ;;  %v830_v43 = vmul.f32 %v1892_v52, %v2157_v40  ;;  %v2289_v22 = vld [vmem:[%s1817_s10 + $0x80] sm:$0xff] }
  0x55   : > { %1451 = vmatprep.mubr.f32.mxu1 %v930_v57  ;;  %v846_v3 = vadd.f32 %v814_v50, %v777_v23  ;;  %v641_v5 = vmul.f32 %v1862_v39, %v2259_v2  ;;  %v414_v15 = vmul.f32 %v1827_v21, %v2264_v56  ;;  %v519_v47 = vmul.f32 %v1837_v28, %v2086_v8 }
  0x56   : > { %v688_v37 = vadd.f32 %v656_v31, %v619_v13  ;;  %v535_v30 = vadd.f32 %v503_v0, %v430_v17  ;;  %v376_v59 = vadd.f32 %v344_v62, %v274_v58  ;;  %v899_v53 = vmul.f32 %v1908_v61, %v2271_v60  ;;  %v2323_v58 = vld [vmem:[%s1817_s10 + $0x81] sm:$0xff] }
  0x57   : > { %v915_v12 = vadd.f32 %v883_v51, %v846_v3  ;;  %v746_v27 = vmul.f32 %v1875_v45, %v2078_v4  ;;  %v588_v29 = vmul.f32 %v1847_v33, %v2177_v9  ;;  %v259_v8 = vmul.f32 %v1809_v18, %v2065_v26  ;;  %v2313_v26 = vld [vmem:[%s1817_s10 + $0x140] sm:$0xff] }
  0x58   : > { %v793_v34 = vadd.f32 %v761_v41, %v688_v37  ;;  %v604_v16 = vadd.f32 %v572_v48, %v535_v30  ;;  %v446_v50 = vadd.f32 %v414_v15, %v376_v59  ;;  %v815_v51 = vmul.f32 %v1892_v52, %v2190_v11  ;;  %v2316_v41 = vld [vmem:[%s1817_s10 + $0x13a] sm:$0xff] }
  0x59   : > { %1428 = vmatmul.mubr.f32.gmra.mrb[4].mxu0 %v915_v12  ;;  %v884_v4 = vmul.f32 %v1908_v61, %v2284_v49  ;;  %v329_v24 = vmul.f32 %v1822_v20, %v2180_v38  ;;  %v399_v31 = vmul.f32 %v1827_v21, %v2289_v22  ;;  %v657_v23 = vmul.f32 %v1862_v39, %v2296_v10 }
  0x5a   : > { %v862_v54 = vadd.f32 %v830_v43, %v793_v34  ;;  %v673_v0 = vadd.f32 %v641_v5, %v604_v16  ;;  %v551_v57 = vadd.f32 %v519_v47, %v446_v50  ;;  %v762_v48 = vmul.f32 %v1875_v45, %v2109_v55  ;;  %v2348_v50 = vld [vmem:[%s1817_s10 + $0x141] sm:$0xff] }
  0x5b   : > { %v831_v13 = vmul.f32 %v1892_v52, %v2211_v63  ;;  %v361_v17 = vadd.f32 %v329_v24, %v259_v8  ;;  %v504_v62 = vmul.f32 %v1837_v28, %v2106_v19  ;;  %v275_v15 = vmul.f32 %v1809_v18, %v2100_v6  ;;  %v2340_v6 = vld [vmem:[%s1817_s10 + $0x90] sm:$0xff] }
  0x5c   : > { %v931_v3 = vadd.f32 %v899_v53, %v862_v54  ;;  %v778_v43 = vadd.f32 %v746_v27, %v673_v0  ;;  %v620_v5 = vadd.f32 %v588_v29, %v551_v57  ;;  %v573_v55 = vmul.f32 %v1847_v33, %v2214_v32  ;;  %v2343_v29 = vld [vmem:[%s1817_s10 + $0x82] sm:$0xff] }
  0x5d   : > { %v431_v37 = vadd.f32 %v399_v31, %v361_v17  ;;  %v345_v30 = vmul.f32 %v1822_v20, %v2204_v44  ;;  %v415_v59 = vmul.f32 %v1827_v21, %v2313_v26  ;;  %v900_v12 = vmul.f32 %v1908_v61, %v2316_v41 }
  0x5e   : > { %1452 = vmatmul.mubr.f32.gmra.mrb[4].mxu1 %v931_v3  ;;  %v847_v19 = vadd.f32 %v815_v51, %v778_v43  ;;  %v689_v47 = vadd.f32 %v657_v23, %v620_v5  ;;  %v642_v53 = vmul.f32 %v1862_v39, %v2323_v58  ;;  %v747_v34 = vmul.f32 %v1875_v45, %v2135_v35  ;;  %v2367_v43 = vld [vmem:[%s1817_s10 + $0x91] sm:$0xff] }
  0x5f   : > { %v536_v27 = vadd.f32 %v504_v62, %v431_v37  ;;  %v377_v16 = vadd.f32 %v345_v30, %v275_v15  ;;  %v520_v8 = vmul.f32 %v1837_v28, %v2129_v46  ;;  %v589_v31 = vmul.f32 %v1847_v33, %v2242_v7  ;;  %v2372_v15 = vld [vmem:[%s1817_s10 + $0x150] sm:$0xff] }
  0x60   : > { %v916_v51 = vadd.f32 %v884_v4, %v847_v19  ;;  %v794_v24 = vadd.f32 %v762_v48, %v689_v47  ;;  %v260_v54 = vmul.f32 %v1809_v18, %v2132_v25  ;;  %v330_v35 = vmul.f32 %v1822_v20, %v2232_v1  ;;  %v2381_v47 = vld [vmem:[%s1817_s10 + $0x142] sm:$0xff] }
  0x61   : > { %v605_v0 = vadd.f32 %v573_v55, %v536_v27  ;;  %v447_v57 = vadd.f32 %v415_v59, %v377_v16  ;;  %v400_v23 = vmul.f32 %v1827_v21, %v2340_v6  ;;  %v816_v4 = vmul.f32 %v1892_v52, %v2235_v14 }
  0x62   : > { %1430 = vmatprep.mubr.f32.mxu0 %v916_v51  ;;  %v863_v46 = vadd.f32 %v831_v13, %v794_v24  ;;  %v885_v48 = vmul.f32 %v1908_v61, %v2343_v29  ;;  %v658_v25 = vmul.f32 %v1862_v39, %v2348_v50  ;;  %v362_v3 = vadd.f32 %v330_v35, %v260_v54  ;;  %v2394_v51 = vld [vmem:[%s1817_s10 + $0x92] sm:$0xff] }
  0x63   : > { %v674_v17 = vadd.f32 %v642_v53, %v605_v0  ;;  %v552_v62 = vadd.f32 %v520_v8, %v447_v57  ;;  %v505_v5 = vmul.f32 %v1837_v28, %v2165_v36  ;;  %v763_v37 = vmul.f32 %v1875_v45, %v2157_v40  ;;  %v2404_v57 = vld [vmem:[%s1817_s10 + $0x151] sm:$0xff] }
  0x64   : > { %v932_v13 = vadd.f32 %v900_v12, %v863_v46  ;;  %v574_v55 = vmul.f32 %v1847_v33, %v2259_v2  ;;  %v276_v30 = vmul.f32 %v1809_v18, %v2151_v42  ;;  %v432_v36 = vadd.f32 %v400_v23, %v362_v3 }
  0x65   : > { %v779_v59 = vadd.f32 %v747_v34, %v674_v17  ;;  %v621_v19 = vadd.f32 %v589_v31, %v552_v62  ;;  %v346_v12 = vmul.f32 %v1822_v20, %v2264_v56  ;;  %v832_v40 = vmul.f32 %v1892_v52, %v2271_v60  ;;  %v2397_v31 = vld [vmem:[%s1817_s10 + $0x98] sm:$0xff] }
  0x66   : > { %1454 = vmatprep.mubr.f32.mxu1 %v932_v13  ;;  %v643_v53 = vmul.f32 %v1862_v39, %v2367_v43  ;;  %v416_v42 = vmul.f32 %v1827_v21, %v2372_v15  ;;  %v521_v27 = vmul.f32 %v1837_v28, %v2177_v9  ;;  %v537_v8 = vadd.f32 %v505_v5, %v432_v36  ;;  %v2431_v36 = vld [vmem:[%s1817_s10 + $0x99] sm:$0xff] }
  0x67   : > { %v848_v34 = vadd.f32 %v816_v4, %v779_v59  ;;  %v690_v16 = vadd.f32 %v658_v25, %v621_v19  ;;  %v378_v24 = vadd.f32 %v346_v12, %v276_v30  ;;  %v901_v54 = vmul.f32 %v1908_v61, %v2381_v47 }
  0x68   : > { %v748_v0 = vmul.f32 %v1875_v45, %v2190_v11  ;;  %v590_v9 = vmul.f32 %v1847_v33, %v2296_v10  ;;  %v261_v35 = vmul.f32 %v1809_v18, %v2180_v38  ;;  %v606_v4 = vadd.f32 %v574_v55, %v537_v8  ;;  %v2424_v55 = vld [vmem:[%s1817_s10 + $0x152] sm:$0xff] }
  0x69   : > { %v917_v23 = vadd.f32 %v885_v48, %v848_v34  ;;  %v795_v46 = vadd.f32 %v763_v37, %v690_v16  ;;  %v448_v25 = vadd.f32 %v416_v42, %v378_v24  ;;  %v817_v17 = vmul.f32 %v1892_v52, %v2284_v49  ;;  %v2421_v37 = vld [vmem:[%s1817_s10 + $0x158] sm:$0xff] }
  0x6a   : > { %v886_v11 = vmul.f32 %v1908_v61, %v2394_v51  ;;  %v331_v62 = vmul.f32 %v1822_v20, %v2289_v22  ;;  %v401_v3 = vmul.f32 %v1827_v21, %v2397_v31  ;;  %v675_v38 = vadd.f32 %v643_v53, %v606_v4  ;;  %v2456_v4 = vld [vmem:[%s1817_s10 + $0x159] sm:$0xff] }
  0x6b   : > { %1431 = vmatmul.mubr.f32.gmra.mrb[6].mxu0 %v917_v23  ;;  %v864_v5 = vadd.f32 %v832_v40, %v795_v46  ;;  %v553_v48 = vadd.f32 %v521_v27, %v448_v25  ;;  %v659_v13 = vmul.f32 %v1862_v39, %v2404_v57  ;;  %v764_v30 = vmul.f32 %v1875_v45, %v2211_v63 }
  0x6c   : > { %v833_v59 = vmul.f32 %v1892_v52, %v2316_v41  ;;  %v363_v19 = vadd.f32 %v331_v62, %v261_v35  ;;  %v506_v12 = vmul.f32 %v1837_v28, %v2214_v32  ;;  %v780_v53 = vadd.f32 %v748_v0, %v675_v38  ;;  %v2451_v35 = vld [vmem:[%s1817_s10 + $0x9a] sm:$0xff] }
  0x6d   : > { %v933_v40 = vadd.f32 %v901_v54, %v864_v5  ;;  %v622_v42 = vadd.f32 %v590_v9, %v553_v48  ;;  %v277_v27 = vmul.f32 %v1809_v18, %v2204_v44  ;;  %v575_v63 = vmul.f32 %v1847_v33, %v2323_v58  ;;  %v2448_v44 = vld [vmem:[%s1817_s10 + $0xa8] sm:$0xff] }
  0x6e   : > { %v433_v34 = vadd.f32 %v401_v3, %v363_v19  ;;  %v347_v16 = vmul.f32 %v1822_v20, %v2313_v26  ;;  %v417_v8 = vmul.f32 %v1827_v21, %v2421_v37  ;;  %v849_v32 = vadd.f32 %v817_v17, %v780_v53  ;;  %v2475_v53 = vld [vmem:[%s1817_s10 + $0xa9] sm:$0xff] }
  0x6f   : > { %1455 = vmatmul.mubr.f32.gmra.mrb[6].mxu1 %v933_v40  ;;  %v691_v24 = vadd.f32 %v659_v13, %v622_v42  ;;  %v902_v54 = vmul.f32 %v1908_v61, %v2424_v55  ;;  %v644_v0 = vmul.f32 %v1862_v39, %v2431_v36  ;;  %v749_v23 = vmul.f32 %v1875_v45, %v2235_v14 }
  0x70   : > { %v538_v9 = vadd.f32 %v506_v12, %v433_v34  ;;  %v379_v46 = vadd.f32 %v347_v16, %v277_v27  ;;  %v522_v25 = vmul.f32 %v1837_v28, %v2242_v7  ;;  %v918_v17 = vadd.f32 %v886_v11, %v849_v32  ;;  %v2480_v27 = vld [vmem:[%s1817_s10 + $0x168] sm:$0xff] }
  0x71   : > { %v796_v62 = vadd.f32 %v764_v30, %v691_v24  ;;  %v591_v3 = vmul.f32 %v1847_v33, %v2348_v50  ;;  %v262_v5 = vmul.f32 %v1809_v18, %v2232_v1  ;;  %v332_v14 = vmul.f32 %v1822_v20, %v2340_v6  ;;  %v2489_v24 = vld [vmem:[%s1817_s10 + $0x15a] sm:$0xff] }
  0x72   : > { %v607_v38 = vadd.f32 %v575_v63, %v538_v9  ;;  %v449_v48 = vadd.f32 %v417_v8, %v379_v46  ;;  %v402_v13 = vmul.f32 %v1827_v21, %v2448_v44  ;;  %1433 = vmatprep.mubr.f32.mxu0 %v918_v17  ;;  %v818_v11 = vmul.f32 %v1892_v52, %v2343_v29  ;;  %v2502_v17 = vld [vmem:[%s1817_s10 + $0xaa] sm:$0xff] }
  0x73   : > { %v865_v7 = vadd.f32 %v833_v59, %v796_v62  ;;  %v887_v30 = vmul.f32 %v1908_v61, %v2451_v35  ;;  %v660_v1 = vmul.f32 %v1862_v39, %v2456_v4  ;;  %v364_v40 = vadd.f32 %v332_v14, %v262_v5 }
  0x74   : > { %v676_v19 = vadd.f32 %v644_v0, %v607_v38  ;;  %v554_v12 = vadd.f32 %v522_v25, %v449_v48  ;;  %v507_v42 = vmul.f32 %v1837_v28, %v2259_v2  ;;  %v765_v34 = vmul.f32 %v1875_v45, %v2271_v60  ;;  %v2512_v48 = vld [vmem:[%s1817_s10 + $0x169] sm:$0xff] }
  0x75   : > { %v934_v59 = vadd.f32 %v902_v54, %v865_v7  ;;  %v576_v63 = vmul.f32 %v1847_v33, %v2367_v43  ;;  %v278_v16 = vmul.f32 %v1809_v18, %v2264_v56  ;;  %v434_v2 = vadd.f32 %v402_v13, %v364_v40 }
  0x76   : > { %v781_v8 = vadd.f32 %v749_v23, %v676_v19  ;;  %v623_v32 = vadd.f32 %v591_v3, %v554_v12  ;;  %v348_v54 = vmul.f32 %v1822_v20, %v2372_v15  ;;  %v834_v60 = vmul.f32 %v1892_v52, %v2381_v47  ;;  %v2505_v3 = vld [vmem:[%s1817_s10 + $0xb0] sm:$0xff] }
  0x77   : > { %1457 = vmatprep.mubr.f32.mxu1 %v934_v59  ;;  %v645_v0 = vmul.f32 %v1862_v39, %v2475_v53  ;;  %v418_v56 = vmul.f32 %v1827_v21, %v2480_v27  ;;  %v523_v9 = vmul.f32 %v1837_v28, %v2296_v10  ;;  %v539_v25 = vadd.f32 %v507_v42, %v434_v2  ;;  %v2529_v59 = vld [vmem:[%s1817_s10 + $0x170] sm:$0xff] }
  0x78   : > { %v850_v23 = vadd.f32 %v818_v11, %v781_v8  ;;  %v692_v46 = vadd.f32 %v660_v1, %v623_v32  ;;  %v380_v62 = vadd.f32 %v348_v54, %v278_v16  ;;  %v903_v5 = vmul.f32 %v1908_v61, %v2489_v24  ;;  %v2539_v8 = vld [vmem:[%s1817_s10 + $0xb1] sm:$0xff] }
  0x79   : > { %v750_v38 = vmul.f32 %v1875_v45, %v2284_v49  ;;  %v592_v10 = vmul.f32 %v1847_v33, %v2404_v57  ;;  %v263_v14 = vmul.f32 %v1809_v18, %v2289_v22  ;;  %v608_v11 = vadd.f32 %v576_v63, %v539_v25 }
  0x7a   : > { %v919_v13 = vadd.f32 %v887_v30, %v850_v23  ;;  %v797_v7 = vadd.f32 %v765_v34, %v692_v46  ;;  %v450_v1 = vadd.f32 %v418_v56, %v380_v62  ;;  %v819_v19 = vmul.f32 %v1892_v52, %v2394_v51  ;;  %v2532_v34 = vld [vmem:[%s1817_s10 + $0x16a] sm:$0xff] }
  0x7b   : > { %v888_v49 = vmul.f32 %v1908_v61, %v2502_v17  ;;  %v333_v12 = vmul.f32 %v1822_v20, %v2397_v31  ;;  %v403_v40 = vmul.f32 %v1827_v21, %v2505_v3  ;;  %v677_v18 = vadd.f32 %v645_v0, %v608_v11 }
  0x7c   : > { %1434 = vmatmul.mubr.f32.gmra.mrb[8].mxu0 %v919_v13  ;;  %v866_v42 = vadd.f32 %v834_v60, %v797_v7  ;;  %v555_v22 = vadd.f32 %v523_v9, %v450_v1  ;;  %v661_v30 = vmul.f32 %v1862_v39, %v2512_v48  ;;  %v766_v63 = vmul.f32 %v1875_v45, %v2316_v41  ;;  %v2546_v60 = vld [vmem:[%s2927_s1] ss:$0 sm:$0xff]  ;;  %v2562_v9 = vld [vmem:[%s2927_s1 + $0x8] ss:$0 sm:$0xff]  ;;  %v2581_v13 = vld [vmem:[%s2927_s1 + $0x1] ss:$0 sm:$0xff] }
  0x7d   : > { %v835_v20 = vmul.f32 %v1892_v52, %v2424_v55  ;;  %v365_v16 = vadd.f32 %v333_v12, %v263_v14  ;;  %v508_v21 = vmul.f32 %v1837_v28, %v2323_v58  ;;  %v782_v2 = vadd.f32 %v750_v38, %v677_v18  ;;  %v2555_v28 = vld [vmem:[%s2927_s1 + $0x4] ss:$0 sm:$0xff]  ;;  %v2576_v14 = vld [vmem:[%s1817_s10 + $0x171] sm:$0xff]  ;;  %v2588_v1 = vld [vmem:[%s2927_s1 + $0x5] ss:$0 sm:$0xff] }
  0x7e   : > { %v935_v32 = vadd.f32 %v903_v5, %v866_v42  ;;  %v624_v54 = vadd.f32 %v592_v10, %v555_v22  ;;  %v279_v41 = vmul.f32 %v2546_v60, %v2313_v26  ;;  %v577_v56 = vmul.f32 %v1847_v33, %v2431_v36  ;;  %v2571_v5 = vld [vmem:[%s1817_s10 + $0xb2] sm:$0xff]  ;;  %v2608_v22 = vld [vmem:[%s2927_s1 + $0x9] ss:$0 sm:$0xff] }
  0x7f   : > { %v435_v0 = vadd.f32 %v403_v40, %v365_v16  ;;  %v349_v58 = vmul.f32 %v2555_v28, %v2421_v37  ;;  %v419_v26 = vmul.f32 %v2562_v9, %v2529_v59  ;;  %v851_v23 = vadd.f32 %v819_v19, %v782_v2 }
  0x80   : > { %1458 = vmatmul.mubr.f32.gmra.mrb[8].mxu1 %v935_v32  ;;  %v693_v46 = vadd.f32 %v661_v30, %v624_v54  ;;  %v904_v33 = vmul.f32 %v1908_v61, %v2532_v34  ;;  %v646_v25 = vmul.f32 %v1862_v39, %v2539_v8  ;;  %v751_v38 = vmul.f32 %v1875_v45, %v2343_v29 }
  0x81   : > { %v540_v62 = vadd.f32 %v508_v21, %v435_v0  ;;  %v381_v10 = vadd.f32 %v349_v58, %v279_v41  ;;  %v524_v7 = vmul.f32 %v2581_v13, %v2348_v50  ;;  %v920_v11 = vadd.f32 %v888_v49, %v851_v23  ;;  %v2597_v50 = vld [vmem:[%s1817_s10 + $0xc0] sm:$0xff] }
  0x82   : > { %v798_v39 = vadd.f32 %v766_v63, %v693_v46  ;;  %v593_v45 = vmul.f32 %v2588_v1, %v2456_v4  ;;  %v264_v29 = vmul.f32 %v2546_v60, %v2340_v6  ;;  %v334_v40 = vmul.f32 %v2555_v28, %v2448_v44  ;;  %v2641_v46 = vld [vmem:[%s1817_s10 + $0xc1] sm:$0xff] }
  0x83   : > { %v609_v19 = vadd.f32 %v577_v56, %v540_v62  ;;  %v451_v12 = vadd.f32 %v419_v26, %v381_v10  ;;  %v404_v49 = vmul.f32 %v2597_v50, %v2562_v9  ;;  %1436 = vmatprep.mubr.f32.mxu0 %v920_v11  ;;  %v820_v18 = vmul.f32 %v1892_v52, %v2451_v35  ;;  %v2615_v52 = vld [vmem:[%s1817_s10 + $0x180] sm:$0xff]  ;;  %v2652_v11 = vld [vmem:[%s2927_s1 + $0xa] ss:$0 sm:$0xff] }
  0x84   : > { %v867_v42 = vadd.f32 %v835_v20, %v798_v39  ;;  %v889_v6 = vmul.f32 %v1908_v61, %v2571_v5  ;;  %v662_v30 = vmul.f32 %v2608_v22, %v2576_v14  ;;  %v366_v21 = vadd.f32 %v334_v40, %v264_v29  ;;  %v2620_v61 = vld [vmem:[%s2927_s1 + $0x2] ss:$0 sm:$0xff] }
  0x85   : > { %v678_v63 = vadd.f32 %v646_v25, %v609_v19  ;;  %v556_v16 = vadd.f32 %v524_v7, %v451_v12  ;;  %v509_v20 = vmul.f32 %v2581_v13, %v2367_v43  ;;  %v767_v2 = vmul.f32 %v2620_v61, %v2381_v47  ;;  %v2629_v43 = vld [vmem:[%s1817_s10 + $0x172] sm:$0xff]  ;;  %v2636_v47 = vld [vmem:[%s2927_s1 + $0x6] ss:$0 sm:$0xff] }
  0x86   : > { %v936_v32 = vadd.f32 %v904_v33, %v867_v42  ;;  %v578_v54 = vmul.f32 %v2588_v1, %v2475_v53  ;;  %v280_v41 = vmul.f32 %v2546_v60, %v2372_v15  ;;  %v436_v58 = vadd.f32 %v404_v49, %v366_v21  ;;  %v2659_v29 = vld [vmem:[%s1817_s10 + $0x181] sm:$0xff] }
  0x87   : > { %v783_v0 = vadd.f32 %v751_v38, %v678_v63  ;;  %v625_v56 = vadd.f32 %v593_v45, %v556_v16  ;;  %v350_v26 = vmul.f32 %v2555_v28, %v2480_v27  ;;  %v836_v23 = vmul.f32 %v2636_v47, %v2489_v24  ;;  %v2942_v16 = vld [vmem:[#allocation6_spill] sm:$0xff] }
  0x88   : > { %1460 = vmatprep.mubr.f32.mxu1 %v936_v32  ;;  %v647_v15 = vmul.f32 %v2641_v46, %v2608_v22  ;;  %v420_v33 = vmul.f32 %v2562_v9, %v2615_v52  ;;  %v525_v25 = vmul.f32 %v2581_v13, %v2404_v57  ;;  %v541_v10 = vadd.f32 %v509_v20, %v436_v58 }
  0x89   : > { %v852_v62 = vadd.f32 %v820_v18, %v783_v0  ;;  %v694_v38 = vadd.f32 %v662_v30, %v625_v56  ;;  %v382_v7 = vadd.f32 %v350_v26, %v280_v41  ;;  %v905_v39 = vmul.f32 %v2652_v11, %v2629_v43  ;;  %v2941_v30 = vld [vmem:[#allocation5_spill] sm:$0xff] }
  0x8a   : > { %v752_v45 = vmul.f32 %v2620_v61, %v2394_v51  ;;  %v594_v57 = vmul.f32 %v2588_v1, %v2512_v48  ;;  %v265_v19 = vmul.f32 %v2546_v60, %v2397_v31  ;;  %v610_v49 = vadd.f32 %v578_v54, %v541_v10  ;;  %v2679_v54 = vld [vmem:[%s1817_s10 + $0x182] sm:$0xff] }
  0x8b   : > { %v921_v12 = vadd.f32 %v889_v6, %v852_v62  ;;  %v799_v40 = vadd.f32 %v767_v2, %v694_v38  ;;  %v452_v42 = vadd.f32 %v420_v33, %v382_v7  ;;  %v821_v18 = vmul.f32 %v2636_v47, %v2502_v17  ;;  %v2676_v2 = vld [vmem:[%s1817_s10 + $0x188] sm:$0xff] }
  0x8c   : > { %v890_v51 = vmul.f32 %v2652_v11, %v2941_v30  ;;  %v335_v63 = vmul.f32 %v2555_v28, %v2505_v3  ;;  %v405_v21 = vmul.f32 %v2562_v9, %v2942_v16  ;;  %v679_v32 = vadd.f32 %v647_v15, %v610_v49 }
  0x8d   : > { %1437 = vmatmul.mubr.f32.gmra.mrb[10].mxu0 %v921_v12  ;;  %v868_v20 = vadd.f32 %v836_v23, %v799_v40  ;;  %v557_v31 = vadd.f32 %v525_v25, %v452_v42  ;;  %v663_v6 = vmul.f32 %v2608_v22, %v2659_v29  ;;  %v768_v41 = vmul.f32 %v2620_v61, %v2424_v55  ;;  %v2702_v12 = vld [vmem:[%s1817_s10 + $0x189] sm:$0xff] }
  0x8e   : > { %v837_v0 = vmul.f32 %v2636_v47, %v2532_v34  ;;  %v367_v56 = vadd.f32 %v335_v63, %v265_v19  ;;  %v510_v58 = vmul.f32 %v2581_v13, %v2431_v36  ;;  %v784_v23 = vadd.f32 %v752_v45, %v679_v32  ;;  %v2944_v32 = vld [vmem:[#allocation8_spill] sm:$0xff] }
  0x8f   : > { %v937_v26 = vadd.f32 %v905_v39, %v868_v20  ;;  %v626_v15 = vadd.f32 %v594_v57, %v557_v31  ;;  %v281_v33 = vmul.f32 %v2546_v60, %v2421_v37  ;;  %v579_v62 = vmul.f32 %v2588_v1, %v2539_v8  ;;  %v2943_v39 = vld [vmem:[#allocation7_spill] sm:$0xff] }
  0x90   : > { %v437_v25 = vadd.f32 %v405_v21, %v367_v56  ;;  %v351_v55 = vmul.f32 %v2555_v28, %v2529_v59  ;;  %v421_v38 = vmul.f32 %v2562_v9, %v2676_v2  ;;  %v853_v10 = vadd.f32 %v821_v18, %v784_v23  ;;  %v1586_v21 = vld [vmem:[%s1817_s10 + $0xd8] sm:$0xff] }
  0x91   : > { %1461 = vmatmul.mubr.f32.gmra.mrb[10].mxu1 %v937_v26  ;;  %v695_v36 = vadd.f32 %v663_v6, %v626_v15  ;;  %v906_v7 = vmul.f32 %v2652_v11, %v2679_v54  ;;  %v648_v37 = vmul.f32 %v2608_v22, %v2943_v39  ;;  %v753_v57 = vmul.f32 %v2620_v61, %v2451_v35 }
  0x92   : > { %v542_v45 = vadd.f32 %v510_v58, %v437_v25  ;;  %v383_v19 = vadd.f32 %v351_v55, %v281_v33  ;;  %v526_v40 = vmul.f32 %v2581_v13, %v2456_v4  ;;  %v922_v49 = vadd.f32 %v890_v51, %v853_v10  ;;  %v245_v58 = vld [vmem:[%s1817_s10 + $0x198] sm:$0xff] }
  0x93   : > { %v800_v42 = vadd.f32 %v768_v41, %v695_v36  ;;  %v595_v18 = vmul.f32 %v2588_v1, %v2576_v14  ;;  %v266_v30 = vmul.f32 %v2546_v60, %v2448_v44  ;;  %v336_v35 = vmul.f32 %v2597_v50, %v2555_v28 }
  0x94   : > { %v611_v63 = vadd.f32 %v579_v62, %v542_v45  ;;  %v453_v16 = vadd.f32 %v421_v38, %v383_v19  ;;  %v406_v20 = vmul.f32 %v1586_v21, %v2562_v9  ;;  %1439 = vmatprep.mubr.f32.mxu0 %v922_v49  ;;  %v822_v51 = vmul.f32 %v2636_v47, %v2571_v5  ;;  %v2730_v62 = vld [vmem:[%s1817_s10 + $0x18a] sm:$0xff] }
  0x95   : > { %v869_v4 = vadd.f32 %v837_v0, %v800_v42  ;;  %v891_v31 = vmul.f32 %v2652_v11, %v2944_v32  ;;  %v664_v44 = vmul.f32 %v2608_v22, %v2702_v12  ;;  %v368_v56 = vadd.f32 %v336_v35, %v266_v30  ;;  %v1588_v30 = vld [vmem:[%s1817_s10 + $0xc2] sm:$0xff]  ;;  %v1591_v32 = vld [vmem:[%s1817_s10 + $0xda] sm:$0xff] }
  0x96   : > { %v680_v6 = vadd.f32 %v648_v37, %v611_v63  ;;  %v558_v41 = vadd.f32 %v526_v40, %v453_v16  ;;  %v511_v50 = vmul.f32 %v2581_v13, %v2475_v53  ;;  %v769_v0 = vmul.f32 %v2620_v61, %v2489_v24  ;;  %v1587_v24 = vld [vmem:[%s1817_s10 + $0xd9] sm:$0xff]  ;;  %v1589_v16 = vld [vmem:[%s1817_s10 + $0xc8] sm:$0xff] }
  0x97   : > { %v938_v26 = vadd.f32 %v906_v7, %v869_v4  ;;  %v580_v23 = vmul.f32 %v2641_v46, %v2588_v1  ;;  %v282_v15 = vmul.f32 %v2546_v60, %v2480_v27  ;;  %v438_v55 = vadd.f32 %v406_v20, %v368_v56 }
  0x98   : > { %v785_v33 = vadd.f32 %v753_v57, %v680_v6  ;;  %v627_v25 = vadd.f32 %v595_v18, %v558_v41  ;;  %v352_v53 = vmul.f32 %v2555_v28, %v2615_v52  ;;  %v838_v38 = vmul.f32 %v2636_v47, %v2629_v43  ;;  %v490_v57 = vld [vmem:[%s1817_s10 + $0x199] sm:$0xff] }
  0x99   : > { %1463 = vmatprep.mubr.f32.mxu1 %v938_v26  ;;  %v649_v10 = vmul.f32 %v1587_v24, %v2608_v22  ;;  %v422_v46 = vmul.f32 %v2562_v9, %v245_v58  ;;  %v527_v27 = vmul.f32 %v2581_v13, %v2512_v48  ;;  %v543_v39 = vadd.f32 %v511_v50, %v438_v55 }
  0x9a   : > { %v854_v36 = vadd.f32 %v822_v51, %v785_v33  ;;  %v696_v7 = vadd.f32 %v664_v44, %v627_v25  ;;  %v384_v37 = vadd.f32 %v352_v53, %v282_v15  ;;  %v907_v52 = vmul.f32 %v2652_v11, %v2730_v62  ;;  %v246_v51 = vld [vmem:[%s1817_s10 + $0x1a0] sm:$0xff]  ;;  %v1592_v15 = vld [vmem:[%s1817_s10 + $0xc9] sm:$0xff] }
  0x9b   : > { %v754_v45 = vmul.f32 %v2620_v61, %v2502_v17  ;;  %v596_v19 = vmul.f32 %v2588_v1, %v2659_v29  ;;  %v267_v40 = vmul.f32 %v2546_v60, %v2505_v3  ;;  %v612_v42 = vadd.f32 %v580_v23, %v543_v39  ;;  %v1590_v17 = vld [vmem:[%s1817_s10 + $0xe0] sm:$0xff] }
  0x9c   : > { %v923_v48 = vadd.f32 %v891_v31, %v854_v36  ;;  %v801_v49 = vadd.f32 %v769_v0, %v696_v7  ;;  %v454_v18 = vadd.f32 %v422_v46, %v384_v37  ;;  %v823_v63 = vmul.f32 %v1588_v30, %v2636_v47  ;;  %v733_v0 = vld [vmem:[%s1817_s10 + $0x19a] sm:$0xff] }
  0x9d   : > { %v337_v35 = vmul.f32 %v1589_v16, %v2555_v28  ;;  %v407_v21 = vmul.f32 %v1590_v17, %v2562_v9  ;;  %v681_v3 = vadd.f32 %v649_v10, %v612_v42  ;;  %v665_v4 = vmul.f32 %v2608_v22, %v490_v57 }
  0x9e   : > { %1440 = vmatmul.mubr.f32.gmra.mrb[12].mxu0 %v923_v48  ;;  %v870_v29 = vadd.f32 %v838_v38, %v801_v49  ;;  %v559_v20 = vadd.f32 %v527_v27, %v454_v18  ;;  %v892_v31 = vmul.f32 %v1591_v32, %v2652_v11  ;;  %v770_v44 = vmul.f32 %v2620_v61, %v2532_v34 }
  0x9f   : > { %v369_v6 = vadd.f32 %v337_v35, %v267_v40  ;;  %v512_v41 = vmul.f32 %v2581_v13, %v2539_v8  ;;  %v786_v50 = vadd.f32 %v754_v45, %v681_v3  ;;  %v283_v26 = vmul.f32 %v2546_v60, %v2529_v59  ;;  %v1593_v59 = vld [vmem:[%s1817_s10 + $0xe1] sm:$0xff] }
  0xa0   : > { %v939_v56 = vadd.f32 %v907_v52, %v870_v29  ;;  %v628_v58 = vadd.f32 %v596_v19, %v559_v20  ;;  %v581_v33 = vmul.f32 %v1592_v15, %v2588_v1  ;;  %v353_v34 = vmul.f32 %v2555_v28, %v2676_v2  ;;  %v1594_v52 = vld [vmem:[%s1817_s10 + $0xca] sm:$0xff]  ;;  %v1595_v40 = vld [vmem:[%s1817_s10 + $0xe2] sm:$0xff] }
  0xa1   : > { %v439_v23 = vadd.f32 %v407_v21, %v369_v6  ;;  %v423_v25 = vmul.f32 %v2562_v9, %v246_v51  ;;  %v855_v8 = vadd.f32 %v823_v63, %v786_v50  ;;  %v839_v53 = vmul.f32 %v2636_v47, %v2679_v54  ;;  %v491_v9 = vld [vmem:[%s1817_s10 + $0x1a1] sm:$0xff] }
  0xa2   : > { %1464 = vmatmul.mubr.f32.gmra.mrb[12].mxu1 %v939_v56  ;;  %v697_v55 = vadd.f32 %v665_v4, %v628_v58  ;;  %v650_v60 = vmul.f32 %v1593_v59, %v2608_v22  ;;  %v385_v24 = vadd.f32 %v353_v34, %v283_v26  ;;  %v528_v10 = vmul.f32 %v2581_v13, %v2576_v14 }
  0xa3   : > { %v544_v38 = vadd.f32 %v512_v41, %v439_v23  ;;  %v924_v46 = vadd.f32 %v892_v31, %v855_v8  ;;  %v908_v28 = vmul.f32 %v2652_v11, %v733_v0  ;;  %v755_v36 = vmul.f32 %v2620_v61, %v2571_v5 }
  0xa4   : > { %v802_v27 = vadd.f32 %v770_v44, %v697_v55  ;;  %v455_v54 = vadd.f32 %v423_v25, %v385_v24  ;;  %v597_v7 = vmul.f32 %v2588_v1, %v2702_v12  ;;  %v824_v14 = vmul.f32 %v1594_v52, %v2636_v47  ;;  %v734_v12 = vld [vmem:[%s1817_s10 + $0x1a2] sm:$0xff]  ;;  %s2805_s10 = scalar_lea.vmem [#allocation2], %s1317_s22 }
  0xa5   : > { %v613_v2 = vadd.f32 %v581_v33, %v544_v38  ;;  %1442 = vmatprep.mubr.f32.mxu0 %v924_v46  ;;  %v666_v45 = vmul.f32 %v2608_v22, %v491_v9  ;;  %v893_v5 = vmul.f32 %v1595_v40, %v2652_v11  ;;  %v771_v1 = vmul.f32 %v2620_v61, %v2629_v43  ;;  %v2801_v61 = vld [vmem:[%s2929_s3] ss:$0 sm:$0xff]  ;;  %s1239_s29 = sshll.u32 %s2805_s10, 4  ;;  %s2873_s29 = int_to_ptr.vmem [resolvable:$true] %s1239_s29 }
  0xa6   : > { %v871_v39 = vadd.f32 %v839_v53, %v802_v27  ;;  %v560_v13 = vadd.f32 %v528_v10, %v455_v54  ;;  %v840_v18 = vmul.f32 %v2636_v47, %v2730_v62  ;;  %v909_v63 = vmul.f32 %v2652_v11, %v734_v12  ;;  %s1596_s7 = scalar_lea.vmem %s2873_s29, 4096  ;;  %p1603_p1 = scmp.lt.s32.totalorder %s2873_s29, %s1601_s11 }
  0xa7   : > { %v682_v37 = vadd.f32 %v650_v60, %v613_v2  ;;  %p1597_p12 = scmp.ne.s32.totalorder %s2873_s29, %s1596_s7  ;;  %p1604_p2 = scmp.lt.s32.totalorder %s1602_s12, %s1596_s7 }
  0xa8   : > { %v940_v57 = vadd.f32 %v908_v28, %v871_v39  ;;  %v629_v48 = vadd.f32 %v597_v7, %v560_v13 }
  0xa9   : > { %v787_v19 = vadd.f32 %v755_v36, %v682_v37  ;;  %p1598_p13 = pnand %p1597_p12, %p1744_p4  ;;  %p1605_p3 = por %p1604_p2, %p1603_p1 }
  0xaa   : > { %1466 = vmatprep.mubr.f32.mxu1 %v940_v57  ;;  %v698_v42 = vadd.f32 %v666_v45, %v629_v48 }
  0xab   : > { %v856_v49 = vadd.f32 %v824_v14, %v787_v19  ;;  %p1599_p0 = pneg %p1598_p13 }
  0xac   : > { %v803_v22 = vadd.f32 %v771_v1, %v698_v42 }
  0xad   : > { %v925_v30 = vadd.f32 %v893_v5, %v856_v49  ;;  %p1606_p5 = pnand %p1605_p3, %p1599_p0 }
  0xae   : > { %v872_v16 = vadd.f32 %v840_v18, %v803_v22 }
  0xaf   : > { %1443 = vmatmul.mubr.f32.gmra.mrb[14].mxu0 %v925_v30 }
  0xb0   : > { %v941_v35 = vadd.f32 %v909_v63, %v872_v16 }
  0xb2   : > { %1467 = vmatmul.mubr.f32.gmra.mrb[14].mxu1 %v941_v35 }
 0x10e   : > { %v1423_v43 = vpop.f32.mrb[0].mxu0 }
 0x10f   : > { %v1037_v17 = vadd.f32 %v1423_v43, %v2801_v61  ;;  %v1031_v47 = vpop.f32.mrb[1].mxu0 }
 0x110   : > { %v1032_v62 = vadd.f32 %v2801_v61, %v1031_v47 }
 0x111   : > { %1191 = vst [vmem:[%s2805_s10 + $0x8] sm:$0xff] %v1037_v17 }
 0x112   : > { %1190 = vst [vmem:[%s2805_s10] sm:$0xff] %v1032_v62 }
 0x113   : > { %v1447_v11 = vpop.f32.mrb[0].mxu1 }
 0x114   : > { %v1117_v21 = vadd.f32 %v1447_v11, %v2801_v61  ;;  %v1111_v29 = vpop.f32.mrb[1].mxu1 }
 0x115   : > { %v1112_v3 = vadd.f32 %v2801_v61, %v1111_v29 }
 0x116   : > { %1207 = vst [vmem:[%s2805_s10 + $0x88] sm:$0xff] %v1117_v21 }
 0x117   : > { %1206 = vst [vmem:[%s2805_s10 + $0x80] sm:$0xff] %v1112_v3 }
 0x11c   : > { %v1426_v20 = vpop.f32.mrb[2].mxu0 }
 0x11d   : > { %v1047_v4 = vadd.f32 %v1426_v20, %v2801_v61  ;;  %v1041_v51 = vpop.f32.mrb[3].mxu0 }
 0x11e   : > { %v1042_v32 = vadd.f32 %v2801_v61, %v1041_v51 }
 0x11f   : > { %1193 = vst [vmem:[%s2805_s10 + $0x18] sm:$0xff] %v1047_v4 }
 0x120   : > { %v1450_v31 = vpop.f32.mrb[2].mxu1  ;;  %1192 = vst [vmem:[%s2805_s10 + $0x10] sm:$0xff] %v1042_v32 }
 0x121   : > { %v1127_v44 = vadd.f32 %v1450_v31, %v2801_v61  ;;  %v1121_v6 = vpop.f32.mrb[3].mxu1 }
 0x122   : > { %v1122_v41 = vadd.f32 %v2801_v61, %v1121_v6 }
 0x123   : > { %1209 = vst [vmem:[%s2805_s10 + $0x98] sm:$0xff] %v1127_v44 }
 0x124   : > { %1208 = vst [vmem:[%s2805_s10 + $0x90] sm:$0xff] %v1122_v41 }
 0x12c   : > { %v1429_v56 = vpop.f32.mrb[4].mxu0 }
 0x12d   : > { %v1057_v50 = vadd.f32 %v1429_v56, %v2801_v61  ;;  %v1051_v58 = vpop.f32.mrb[5].mxu0 }
 0x12e   : > { %v1052_v26 = vadd.f32 %v2801_v61, %v1051_v58 }
 0x12f   : > { %1195 = vst [vmem:[%s2805_s10 + $0x28] sm:$0xff] %v1057_v50 }
 0x130   : > { %1194 = vst [vmem:[%s2805_s10 + $0x20] sm:$0xff] %v1052_v26 }
 0x131   : > { %v1453_v0 = vpop.f32.mrb[4].mxu1 }
 0x132   : > { %v1137_v23 = vadd.f32 %v1453_v0, %v2801_v61  ;;  %v1131_v15 = vpop.f32.mrb[5].mxu1 }
 0x133   : > { %v1132_v33 = vadd.f32 %v2801_v61, %v1131_v15 }
 0x134   : > { %1211 = vst [vmem:[%s2805_s10 + $0xa8] sm:$0xff] %v1137_v23 }
 0x135   : > { %1210 = vst [vmem:[%s2805_s10 + $0xa0] sm:$0xff] %v1132_v33 }
 0x13e   : > { %v1432_v34 = vpop.f32.mrb[6].mxu0 }
 0x13f   : > { %v1067_v25 = vadd.f32 %v1432_v34, %v2801_v61  ;;  %v1061_v8 = vpop.f32.mrb[7].mxu0 }
 0x140   : > { %v1062_v55 = vadd.f32 %v2801_v61, %v1061_v8 }
 0x141   : > { %1197 = vst [vmem:[%s2805_s10 + $0x38] sm:$0xff] %v1067_v25 }
 0x142   : > { %v1456_v53 = vpop.f32.mrb[6].mxu1  ;;  %1196 = vst [vmem:[%s2805_s10 + $0x30] sm:$0xff] %v1062_v55 }
 0x143   : > { %v1147_v38 = vadd.f32 %v1456_v53, %v2801_v61  ;;  %v1141_v59 = vpop.f32.mrb[7].mxu1 }
 0x144   : > { %v1142_v60 = vadd.f32 %v2801_v61, %v1141_v59 }
 0x145   : > { %1213 = vst [vmem:[%s2805_s10 + $0xb8] sm:$0xff] %v1147_v38 }
 0x146   : > { %1212 = vst [vmem:[%s2805_s10 + $0xb0] sm:$0xff] %v1142_v60 }
 0x14f   : > { %v1435_v24 = vpop.f32.mrb[8].mxu0 }
 0x150   : > { %v1077_v10 = vadd.f32 %v1435_v24, %v2801_v61  ;;  %v1071_v46 = vpop.f32.mrb[9].mxu0 }
 0x151   : > { %v1072_v27 = vadd.f32 %v2801_v61, %v1071_v46 }
 0x152   : > { %1199 = vst [vmem:[%s2805_s10 + $0x48] sm:$0xff] %v1077_v10 }
 0x153   : > { %v1459_v28 = vpop.f32.mrb[8].mxu1  ;;  %1198 = vst [vmem:[%s2805_s10 + $0x40] sm:$0xff] %v1072_v27 }
 0x154   : > { %v1157_v9 = vadd.f32 %v1459_v28, %v2801_v61  ;;  %v1151_v2 = vpop.f32.mrb[9].mxu1 }
 0x155   : > { %v1152_v36 = vadd.f32 %v2801_v61, %v1151_v2 }
 0x156   : > { %1215 = vst [vmem:[%s2805_s10 + $0xc8] sm:$0xff] %v1157_v9 }
 0x157   : > { %1214 = vst [vmem:[%s2805_s10 + $0xc0] sm:$0xff] %v1152_v36 }
 0x160   : > { %v1438_v54 = vpop.f32.mrb[10].mxu0 }
 0x161   : > { %v1087_v7 = vadd.f32 %v1438_v54, %v2801_v61  ;;  %v1081_v39 = vpop.f32.mrb[11].mxu0 }
 0x162   : > { %v1082_v37 = vadd.f32 %v2801_v61, %v1081_v39 }
 0x163   : > { %1201 = vst [vmem:[%s2805_s10 + $0x58] sm:$0xff] %v1087_v7 }
 0x164   : > { %v1462_v52 = vpop.f32.mrb[10].mxu1  ;;  %1200 = vst [vmem:[%s2805_s10 + $0x50] sm:$0xff] %v1082_v37 }
 0x165   : > { %v1167_v14 = vadd.f32 %v1462_v52, %v2801_v61  ;;  %v1161_v13 = vpop.f32.mrb[11].mxu1 }
 0x166   : > { %v1162_v45 = vadd.f32 %v2801_v61, %v1161_v13 }
 0x167   : > { %1217 = vst [vmem:[%s2805_s10 + $0xd8] sm:$0xff] %v1167_v14 }
 0x168   : > { %1216 = vst [vmem:[%s2805_s10 + $0xd0] sm:$0xff] %v1162_v45 }
 0x171   : > { %v1441_v57 = vpop.f32.mrb[12].mxu0 }
 0x172   : > { %v1097_v19 = vadd.f32 %v1441_v57, %v2801_v61  ;;  %v1091_v40 = vpop.f32.mrb[13].mxu0 }
 0x173   : > { %v1092_v5 = vadd.f32 %v2801_v61, %v1091_v40 }
 0x174   : > { %1203 = vst [vmem:[%s2805_s10 + $0x68] sm:$0xff] %v1097_v19 }
 0x175   : > { %v1465_v48 = vpop.f32.mrb[12].mxu1  ;;  %1202 = vst [vmem:[%s2805_s10 + $0x60] sm:$0xff] %v1092_v5 }
 0x176   : > { %v1177_v1 = vadd.f32 %v1465_v48, %v2801_v61  ;;  %v1171_v12 = vpop.f32.mrb[13].mxu1 }
 0x177   : > { %v1172_v49 = vadd.f32 %v2801_v61, %v1171_v12 }
 0x178   : > { %1219 = vst [vmem:[%s2805_s10 + $0xe8] sm:$0xff] %v1177_v1 }
 0x179   : > { %1218 = vst [vmem:[%s2805_s10 + $0xe0] sm:$0xff] %v1172_v49 }
 0x182   : > { %v1444_v42 = vpop.f32.mrb[14].mxu0 }
 0x183   : > { %v1107_v18 = vadd.f32 %v1444_v42, %v2801_v61  ;;  %v1101_v30 = vpop.f32.mrb[15].mxu0 }
 0x184   : > { %v1102_v22 = vadd.f32 %v2801_v61, %v1101_v30 }
 0x185   : > { %1205 = vst [vmem:[%s2805_s10 + $0x78] sm:$0xff] %v1107_v18  ;;  %v1468_v63 = vpop.f32.mrb[14].mxu1 }
 0x186   : > { %1204 = vst [vmem:[%s2805_s10 + $0x70] sm:$0xff] %v1102_v22  ;;  %v1187_v16 = vadd.f32 %v1468_v63, %v2801_v61  ;;  %v1181_v35 = vpop.f32.mrb[15].mxu1 }
 0x187   : > { %v1182_v43 = vadd.f32 %v2801_v61, %v1181_v35 }
 0x188   : > { %1221 = vst [vmem:[%s2805_s10 + $0xf8] sm:$0xff] %v1187_v16 }
 0x189   : > { %1220 = vst [vmem:[%s2805_s10 + $0xf0] sm:$0xff] %v1182_v43 }
 0x18a   : > { %1609 = shalt.err (!%p1606_p5)
}
 0x18b   : > { %s1610_s13 = scalar_lea.hbm %s2871_s6, 4096  ;;  %s1614_s22 = scalar_lea.hbm %s2930_s4, 8192 }
 0x18c   : > { %p1611_p6 = scmp.ne.s32.totalorder %s2871_s6, %s1610_s13  ;;  %p1615_p10 = scmp.lt.u32.totalorder %s2871_s6, %s2930_s4 }
 0x18d   : > { %p1616_p11 = scmp.lt.u32.totalorder %s1614_s22, %s1610_s13  ;;  %p1618_p13 = scmp.lt.u32.totalorder %s1610_s13, %s2871_s6 }
 0x18e   : > { %p1612_p7 = pnand %p1611_p6, %p1744_p4 }
 0x18f   : > { %p1617_p12 = por %p1616_p11, %p1615_p10 }
 0x190   : > { %p1613_p9 = pneg %p1612_p7 }
 0x191   : > { %p1619_p0 = por %p1618_p13, %p1617_p12 }
 0x193   : > { %p1620_p1 = pnand %p1619_p0, %p1613_p9 }
 0x195   : > { %1623 = shalt.err (!%p1620_p1)
}
 0x196   : > { %s1677_s10 = smov 128   ;;  %s1678_s26 = smov 8  }
 0x197   : > { %1518 = dma.vmem_to_hbm [thread:$0]  (%p1744_p4), %s2873_s29, 4096, %s2871_s6, %s2880_s18, %s1677_s10, %s1677_s10, %s1678_s26  }
 0x198 PF: > { %p1524_p2 = scmp.ge.s32.totalorder %s1674_s20, 2  ;;  %s1254_s30 = sand.u32 1, %s1654_s15  }
 0x199   : > { %s1255_s5 = scalar_lea.sflag [#allocation3], %s1254_s30 }
 0x19a   : > { %p1521_p3 = pnand %p1524_p2, %p1751_p8 }
 0x19c   : > { %1649 = dma.done.wait (!%p1521_p3), %s1255_s5, 4096  }
 0x19d   : > { %1651 = vsyncadd (!%p1521_p3), %s1255_s5, 4294963200  ;;  %s17_s20 = sadd.s32 1, %s1674_s20   ;;  %s2945_s15 = smov %s1658_s16 }
 0x19e   : > { %p14_p5 = scmp.ge.s32.totalorder %s17_s20, 4   ;;  %s2946_s16 = smov %s1662_s17 }
 0x19f   : > { %s2947_s17 = smov %s1757_s28  ;;  %s2948_s18 = smov %s1670_s19 }
 0x1a0   : > { %s2949_s19 = smov %s2951_s23  ;;  %16 = sbr.rel (!%p14_p5) target bundleno = 4 (0x4), region = 73 }
 0x1a7   :  { %1260 = vsyncpa [#allocation3], 1 }
 0x1a8   :  { %1262 = vsyncpa [#allocation3 + $0x1], 1 }

</bundles_post_ra>
